<compile_context>
chip_gen: v6e
topology: v6e:2x2x1
jax: 0.10.0
libtpu: 0.0.40
codegen_flags: <defaults>
</compile_context>

<pallas_src>
import functools

import jax
import jax.numpy as jnp
from jax.experimental import pallas as pl
from jax.experimental.pallas import tpu as pltpu


HIDDEN = 128                       # per-point embedding width (lane-dense)
OUT_DIM = 3                        # regressed per-point coordinates
MAX_TILE = 4096                    # point-tile cap (review: 4K-8K is past the knee)


def _round_up(x, m):
    return (x + m - 1) // m * m


# ----------------------------- Pallas kernel ---------------------------------
def _regressor_kernel(return_emb, feat_ref, xyz_ref, w1f_ref, w1x_ref, b1_ref,
                      w2_ref, b2_ref, *out_refs):
    """Point-major per-point MLP on a tile of T points.

    feat_ref: (T, C)   xyz_ref: (T, 3)
    w1f: (C, H)  w1x: (3, H)  b1: (1, H)  w2: (H, OUT)  b2: (1, OUT)
    outputs: coords (T, OUT) [+ emb (T, H) if return_emb]
    """
    x = feat_ref[...]                                    # (T, C) f32
    p = xyz_ref[...]                                     # (T, 3) f32
    # Layer 1: (T,C)@(C,H) + (T,3)@(3,H) — tiny-K MXU passes; kernel is HBM bound.
    h = jnp.dot(x, w1f_ref[...], preferred_element_type=jnp.float32)
    h = h + jnp.dot(p, w1x_ref[...], preferred_element_type=jnp.float32)
    h = jnp.maximum(h + b1_ref[...], 0.0)                # bias (1,H): sublane-broadcast
    # Layer 2: (T,H)@(H,OUT)
    y = jnp.dot(h, w2_ref[...], preferred_element_type=jnp.float32)
    y = y + b2_ref[...]                                  # (T, OUT)

    if return_emb:
        coords_ref, emb_ref = out_refs
        emb_ref[...] = h.astype(emb_ref.dtype)           # lane-dense (T, 128) store
    else:
        (coords_ref,) = out_refs
    coords_ref[...] = y.astype(coords_ref.dtype)


def regressor_forward(local_features, xyz, w1f, w1x, b1, w2, b2,
                      return_emb=False, emb_dtype=jnp.float32):
    """local_features: [N, C], xyz: [N, 3] -> coords [N, 3] (+ emb [N, H])."""
    n, c = local_features.shape
    hdim = w1f.shape[1]
    odim = w2.shape[1]

    # Tile selection: small enough to keep the double-buffered working set tiny and to
    # give >= 2 grid steps (v7x megacore) whenever N >= 1024; large enough (>=512 rows)
    # to amortize the ~0.35 us per-grid-step pipeline overhead.
    tile_n = min(MAX_TILE, max(512, _round_up(pl.cdiv(n, 4), 512)))
    n_pad = _round_up(n, tile_n)

    feat = local_features.astype(jnp.float32)
    pts = xyz.astype(jnp.float32)
    if n_pad != n:  # pad only when needed (no unconditional wrapper HBM pass)
        feat = jnp.pad(feat, ((0, n_pad - n), (0, 0)))
        pts = jnp.pad(pts, ((0, n_pad - n), (0, 0)))

    grid = (n_pad // tile_n,)

    out_shape = [jax.ShapeDtypeStruct((n_pad, odim), jnp.float32)]
    out_specs = [pl.BlockSpec((tile_n, odim), lambda i: (i, 0))]
    if return_emb:
        out_shape.append(jax.ShapeDtypeStruct((n_pad, hdim), emb_dtype))
        out_specs.append(pl.BlockSpec((tile_n, hdim), lambda i: (i, 0)))

    # Size the VMEM limit from the actual working set (double-buffered I/O tiles,
    # the (T,H) intermediate and the resident weights), with a 2x safety factor.
    f32 = 4
    io_tile = tile_n * (c + 3 + odim) * f32
    if return_emb:
        io_tile += tile_n * hdim * jnp.dtype(emb_dtype).itemsize
    weights_bytes = (c * hdim + 3 * hdim + hdim + hdim * odim + odim) * f32
    working = 2 * io_tile + tile_n * hdim * f32 + 2 * weights_bytes
    vmem_limit = int(min(64 * 1024 * 1024, max(16 * 1024 * 1024, 2 * working)))

    outs = pl.pallas_call(
        functools.partial(_regressor_kernel, return_emb),
        out_shape=tuple(out_shape),
        grid_spec=pltpu.PrefetchScalarGridSpec(
            num_scalar_prefetch=0,
            grid=grid,
            in_specs=[
                pl.BlockSpec((tile_n, c), lambda i: (i, 0)),     # feat tile
                pl.BlockSpec((tile_n, 3), lambda i: (i, 0)),     # xyz tile
                pl.BlockSpec((c, hdim), lambda i: (0, 0)),       # W1f (resident)
                pl.BlockSpec((3, hdim), lambda i: (0, 0)),       # W1x (resident)
                pl.BlockSpec((1, hdim), lambda i: (0, 0)),       # b1
                pl.BlockSpec((hdim, odim), lambda i: (0, 0)),    # W2 (resident)
                pl.BlockSpec((1, odim), lambda i: (0, 0)),       # b2
            ],
            out_specs=tuple(out_specs),
        ),
        compiler_params=pltpu.CompilerParams(
            dimension_semantics=("parallel",),       # shards point tiles across TCs (v7x)
            vmem_limit_bytes=vmem_limit,
        ),
    )(feat, pts, w1f, w1x, b1, w2, b2)

    coords = outs[0][:n] if n_pad != n else outs[0]      # [N, OUT]
    if return_emb:
        emb = outs[1][:n] if n_pad != n else outs[1]     # [N, H]
        return coords, emb
    return coords


# ----------------------------- module wrappers --------------------------------
class RegressorPallas:
    """Stand-in for model_zoo.Regressor(args, N, C): per-point MLP head."""

    def __init__(self, N=1024, C=32, hidden=HIDDEN, out_dim=OUT_DIM, *, key):
        self.N, self.C, self.hidden, self.out_dim = N, C, hidden, out_dim
        k1, k2, k3, k4, k5 = jax.random.split(key, 5)
        # Weights stored in kernel-friendly (in, out) orientation; they are tiny,
        # so orientation has no HBM-traffic impact.
        self.w1f = jax.random.normal(k1, (C, hidden), jnp.float32) * (1.0 / C ** 0.5)
        self.w1x = jax.random.normal(k2, (3, hidden), jnp.float32) * (1.0 / 3 ** 0.5)
        self.b1 = jax.random.normal(k3, (1, hidden), jnp.float32) * 0.01
        self.w2 = jax.random.normal(k4, (hidden, out_dim), jnp.float32) * (1.0 / hidden ** 0.5)
        self.b2 = jax.random.normal(k5, (1, out_dim), jnp.float32) * 0.01

    def __call__(self, local_features, xyz, return_emb=False):
        return regressor_forward(local_features, xyz, self.w1f, self.w1x,
                                 self.b1, self.w2, self.b2, return_emb)


class SceneRegressorPallas:
    """JAX/Pallas counterpart of SceneRegressor.forward."""

    def __init__(self, args=None, N=1024, C=32, *, key):
        del args  # TODO(synk): args-dependent Regressor configuration not reproduced.
        self.regressor = RegressorPallas(N=N, C=C, key=key)

    def __call__(self, local_features, xyz, return_emb=False):
        return self.regressor(local_features, xyz, return_emb)


# ----------------------------- reference (plain JAX) ---------------------------
def _reference(local_features, xyz, w1f, w1x, b1, w2, b2):
    h = jnp.maximum(local_features @ w1f + xyz @ w1x + b1, 0.0)   # (N, H)
    coords = h @ w2 + b2                                          # (N, OUT)
    return coords, h


# ----------------------------- main --------------------------------------------
if __name__ == "__main__":
    key = jax.random.PRNGKey(0)
    k_feat, k_xyz, k_model = jax.random.split(key, 3)

    N, C = 1024, 32                       # SceneRegressor defaults (N=1024, C=32)
    local_features = jax.random.normal(k_feat, (N, C), jnp.float32)
    xyz = jax.random.uniform(k_xyz, (N, 3), jnp.float32) * 2.0 - 1.0

    model = SceneRegressorPallas(args=None, N=N, C=C, key=k_model)

    coords, emb = model(local_features, xyz, return_emb=True)
    coords = jax.block_until_ready(coords)
    emb = jax.block_until_ready(emb)

    reg = model.regressor
    ref_coords, ref_emb = _reference(local_features, xyz, reg.w1f, reg.w1x,
                                     reg.b1, reg.w2, reg.b2)
    assert coords.shape == (N, OUT_DIM)
    assert emb.shape == (N, HIDDEN)
    assert jnp.allclose(coords, ref_coords, atol=1e-4, rtol=1e-4)
    assert jnp.allclose(emb, ref_emb, atol=1e-4, rtol=1e-4)

    # Also exercise the return_emb=False variant (coords is the only output).
    coords_only = jax.block_until_ready(model(local_features, xyz))
    assert jnp.allclose(coords_only, ref_coords, atol=1e-4, rtol=1e-4)

    # And a non-tile-multiple point count to exercise the padded path.
    Nodd = 777
    lf_odd = local_features[:Nodd]
    xyz_odd = xyz[:Nodd]
    coords_odd, emb_odd = model(lf_odd, xyz_odd, return_emb=True)
    coords_odd = jax.block_until_ready(coords_odd)
    assert coords_odd.shape == (Nodd, OUT_DIM) and emb_odd.shape == (Nodd, HIDDEN)
    assert jnp.allclose(coords_odd, ref_coords[:Nodd], atol=1e-4, rtol=1e-4)

    print("KERNEL_OK")
</pallas_src>

<mosaic_0001>
module attributes {stable_mosaic.version = 11 : i64} {
  func.func @_regressor_kernel(%arg0: i32, %arg1: memref<512x32xf32, #tpu.memory_space<vmem>>, %arg2: memref<512x3xf32, #tpu.memory_space<vmem>>, %arg3: memref<32x128xf32, #tpu.memory_space<vmem>>, %arg4: memref<3x128xf32, #tpu.memory_space<vmem>>, %arg5: memref<1x128xf32, #tpu.memory_space<vmem>>, %arg6: memref<128x3xf32, #tpu.memory_space<vmem>>, %arg7: memref<1x3xf32, #tpu.memory_space<vmem>>, %arg8: memref<512x3xf32, #tpu.memory_space<vmem>>, %arg9: memref<512x128xf32, #tpu.memory_space<vmem>>) attributes {dimension_semantics = [#tpu.dimension_semantics<parallel>], iteration_bounds = array<i64: 2>, scalar_prefetch = 0 : i64, scratch_operands = 0 : i64, tpu.core_type = #tpu.core_type<tc>, window_params = [{transform_indices = @transform_0, window_bounds = array<i64: 512, 32>}, {transform_indices = @transform_1, window_bounds = array<i64: 512, 3>}, {pipeline_mode = #tpu.pipeline_mode<synchronous>, transform_indices = @transform_2, window_bounds = array<i64: 32, 128>}, {pipeline_mode = #tpu.pipeline_mode<synchronous>, transform_indices = @transform_3, window_bounds = array<i64: 3, 128>}, {pipeline_mode = #tpu.pipeline_mode<synchronous>, transform_indices = @transform_4, window_bounds = array<i64: 1, 128>}, {pipeline_mode = #tpu.pipeline_mode<synchronous>, transform_indices = @transform_5, window_bounds = array<i64: 128, 3>}, {pipeline_mode = #tpu.pipeline_mode<synchronous>, transform_indices = @transform_6, window_bounds = array<i64: 1, 3>}, {transform_indices = @transform_7, window_bounds = array<i64: 512, 3>}, {transform_indices = @transform_8, window_bounds = array<i64: 512, 128>}]} {
    %c0 = arith.constant 0 : index
    %c0_0 = arith.constant 0 : index
    %0 = vector.load %arg1[%c0, %c0_0] : memref<512x32xf32, #tpu.memory_space<vmem>>, vector<512x32xf32>
    %c0_1 = arith.constant 0 : index
    %c0_2 = arith.constant 0 : index
    %1 = vector.load %arg2[%c0_1, %c0_2] : memref<512x3xf32, #tpu.memory_space<vmem>>, vector<512x3xf32>
    %c0_3 = arith.constant 0 : index
    %c0_4 = arith.constant 0 : index
    %2 = vector.load %arg3[%c0_3, %c0_4] : memref<32x128xf32, #tpu.memory_space<vmem>>, vector<32x128xf32>
    %cst = arith.constant dense<0.000000e+00> : vector<512x128xf32>
    %3 = tpu.matmul %0, %2, %cst {dimension_numbers = #tpu.dot_dimension_numbers<[1], [0], [0], [1], [0, 0, 1, 1], [], []>} : vector<512x32xf32>, vector<32x128xf32>, vector<512x128xf32> -> vector<512x128xf32>
    %c0_5 = arith.constant 0 : index
    %c0_6 = arith.constant 0 : index
    %4 = vector.load %arg4[%c0_5, %c0_6] : memref<3x128xf32, #tpu.memory_space<vmem>>, vector<3x128xf32>
    %cst_7 = arith.constant dense<0.000000e+00> : vector<512x128xf32>
    %5 = tpu.matmul %1, %4, %cst_7 {dimension_numbers = #tpu.dot_dimension_numbers<[1], [0], [0], [1], [0, 0, 1, 1], [], []>} : vector<512x3xf32>, vector<3x128xf32>, vector<512x128xf32> -> vector<512x128xf32>
    %6 = arith.addf %3, %5 : vector<512x128xf32>
    %c0_8 = arith.constant 0 : index
    %c0_9 = arith.constant 0 : index
    %7 = vector.load %arg5[%c0_8, %c0_9] : memref<1x128xf32, #tpu.memory_space<vmem>>, vector<1x128xf32>
    %8 = vector.broadcast %7 : vector<1x128xf32> to vector<512x128xf32>
    %9 = arith.addf %6, %8 : vector<512x128xf32>
    %cst_10 = arith.constant 0.000000e+00 : f32
    %10 = vector.broadcast %cst_10 : f32 to vector<512x128xf32>
    %11 = arith.maximumf %9, %10 : vector<512x128xf32>
    %c0_11 = arith.constant 0 : index
    %c0_12 = arith.constant 0 : index
    %12 = vector.load %arg6[%c0_11, %c0_12] : memref<128x3xf32, #tpu.memory_space<vmem>>, vector<128x3xf32>
    %cst_13 = arith.constant dense<0.000000e+00> : vector<512x3xf32>
    %13 = tpu.matmul %11, %12, %cst_13 {dimension_numbers = #tpu.dot_dimension_numbers<[1], [0], [0], [1], [0, 0, 1, 1], [], []>} : vector<512x128xf32>, vector<128x3xf32>, vector<512x3xf32> -> vector<512x3xf32>
    %c0_14 = arith.constant 0 : index
    %c0_15 = arith.constant 0 : index
    %14 = vector.load %arg7[%c0_14, %c0_15] : memref<1x3xf32, #tpu.memory_space<vmem>>, vector<1x3xf32>
    %15 = vector.broadcast %14 : vector<1x3xf32> to vector<512x3xf32>
    %16 = arith.addf %13, %15 : vector<512x3xf32>
    %c0_16 = arith.constant 0 : index
    %c0_17 = arith.constant 0 : index
    %17 = vector.load %arg9[%c0_16, %c0_17] : memref<512x128xf32, #tpu.memory_space<vmem>>, vector<512x128xf32>
    tpu.vector_store %arg9[%c0_16, %c0_17], %11 {strides = array<i32>} : memref<512x128xf32, #tpu.memory_space<vmem>>, vector<512x128xf32>,
    %c0_18 = arith.constant 0 : index
    %c0_19 = arith.constant 0 : index
    %18 = vector.load %arg8[%c0_18, %c0_19] : memref<512x3xf32, #tpu.memory_space<vmem>>, vector<512x3xf32>
    tpu.vector_store %arg8[%c0_18, %c0_19], %16 {strides = array<i32>} : memref<512x3xf32, #tpu.memory_space<vmem>>, vector<512x3xf32>,
    return
  }
  func.func @transform_0(%arg0: i32) -> (i32, i32) {
    %c0_i32 = arith.constant 0 : i32
    %c0_i32_0 = arith.constant 0 : i32
    return %arg0, %c0_i32 : i32, i32
  }
  func.func @transform_1(%arg0: i32) -> (i32, i32) {
    %c0_i32 = arith.constant 0 : i32
    %c0_i32_0 = arith.constant 0 : i32
    return %arg0, %c0_i32 : i32, i32
  }
  func.func @transform_2(%arg0: i32) -> (i32, i32) {
    %c0_i32 = arith.constant 0 : i32
    %c0_i32_0 = arith.constant 0 : i32
    %c0_i32_1 = arith.constant 0 : i32
    return %c0_i32, %c0_i32_0 : i32, i32
  }
  func.func @transform_3(%arg0: i32) -> (i32, i32) {
    %c0_i32 = arith.constant 0 : i32
    %c0_i32_0 = arith.constant 0 : i32
    %c0_i32_1 = arith.constant 0 : i32
    return %c0_i32, %c0_i32_0 : i32, i32
  }
  func.func @transform_4(%arg0: i32) -> (i32, i32) {
    %c0_i32 = arith.constant 0 : i32
    %c0_i32_0 = arith.constant 0 : i32
    %c0_i32_1 = arith.constant 0 : i32
    return %c0_i32, %c0_i32_0 : i32, i32
  }
  func.func @transform_5(%arg0: i32) -> (i32, i32) {
    %c0_i32 = arith.constant 0 : i32
    %c0_i32_0 = arith.constant 0 : i32
    %c0_i32_1 = arith.constant 0 : i32
    return %c0_i32, %c0_i32_0 : i32, i32
  }
  func.func @transform_6(%arg0: i32) -> (i32, i32) {
    %c0_i32 = arith.constant 0 : i32
    %c0_i32_0 = arith.constant 0 : i32
    %c0_i32_1 = arith.constant 0 : i32
    return %c0_i32, %c0_i32_0 : i32, i32
  }
  func.func @transform_7(%arg0: i32) -> (i32, i32) {
    %c0_i32 = arith.constant 0 : i32
    %c0_i32_0 = arith.constant 0 : i32
    return %arg0, %c0_i32 : i32, i32
  }
  func.func @transform_8(%arg0: i32) -> (i32, i32) {
    %c0_i32 = arith.constant 0 : i32
    %c0_i32_0 = arith.constant 0 : i32
    return %arg0, %c0_i32 : i32, i32
  }
}

</mosaic_0001>

<bundles_post_ra>
// kernel: tpu_custom_call.1
= control target key start
LH: loop header
LB: loop body
LE: loop exit
PB: predicated region body
PF: predicated region fallthrough
CT: control target
= control target key end

     0   :  { %14 = vsyncpa [#allocation3], 0  ;;  %s4194_s0 = inlined_call_operand.vmem [shape: f32[1024,32], index: 0, kind: input, shape index: {}]   ;;  %s4195_s1 = inlined_call_operand.vmem [shape: f32[1024,3], index: 1, kind: input, shape index: {}]   ;;  %s4196_s2 = inlined_call_operand.vmem [shape: f32[32,128], index: 2, kind: input, shape index: {}]   ;;  %s4197_s3 = inlined_call_operand.vmem [shape: f32[3,128], index: 3, kind: input, shape index: {}]   ;;  %s4198_s4 = inlined_call_operand.vmem [shape: f32[1,128], index: 4, kind: input, shape index: {}]   ;;  %s4199_s5 = inlined_call_operand.vmem [shape: f32[128,3], index: 5, kind: input, shape index: {}]   ;;  %s4200_s6 = inlined_call_operand.vmem [shape: f32[1,3], index: 6, kind: input, shape index: {}]   ;;  %s4201_s7 = inlined_call_operand.vmem [shape: f32[1024,3], index: 7, kind: output, shape index: {0}]   ;;  %s4202_s8 = inlined_call_operand.hbm [shape: f32[1024,128], index: 8, kind: output, shape index: {1}]  }
   0x1   :  { %16 = vsyncpa [#allocation3 + $0x1], 0  ;;  %s3273_s27 = smov 0   ;;  %s3275_s28 = smov 0  }
   0x2   :  { %s3277_s29 = smov 0   ;;  %s3279_s30 = smov 0  }
   0x3 LB: > { %s3294_s9 = sadd.s32 4294967295, %s3223_s30   ;;  %s2429_s10 = sadd.s32 4294967294, %s3223_s30   ;;  %s3223_s30 = sphi %s3279_s30, %s4208_s30   ;;  %s3219_s29 = sphi %s3277_s29, %s4207_s29   ;;  %s3215_s28 = sphi %s3275_s28, %s4206_s28   ;;  %s3211_s27 = sphi %s3273_s27, %s4205_s27  }
   0x4   : > { %s3298_s11 = sadd.s32 1, %s3223_s30   ;;  %s212_s12 = sadd.s32 1, %s3219_s29 }
   0x5   : > { %s209_s13 = ssub.s32 %s3223_s30, %s3298_s11  ;;  %p222_p0 = scmp.ne.s32.totalorder %s3219_s29, %s3215_s28 }
   0x6   : > { %p210_p1 = scmp.eq.s32.totalorder %s209_s13, 0  ;;  %p223_p2 = scmp.eq.s32.totalorder %s3294_s9, 1 }
   0x7   : > { %p228_p3 = scmp.ne.s32.totalorder %s3215_s28, %s3211_s27  ;;  %p229_p4 = scmp.eq.s32.totalorder %s2429_s10, 1 }
   0x8   : > { %s3309_s14 = scalar_select %p210_p1, %s3219_s29, %s212_s12  }
   0x9   : > { %p3311_p5 = por %p223_p2, %p222_p0  ;;  %p3315_p6 = por %p229_p4, %p228_p3 }
   0xa   : > { %p2432_p7 = scmp.ge.s32.totalorder %s3223_s30, 1  ;;  %p280_p8 = scmp.lt.s32.totalorder %s3223_s30, 3 }
   0xc   : > { %p281_p9 = pnand %p2432_p7, %p280_p8 }
   0xd   : > { %s2434_s19 = sshll.u32 (!%p281_p9), %s3294_s9, 6  ;;  %s2576_s18 = sshll.u32 (!%p281_p9), %s3294_s9, 13 }
   0xe   : > { %284 = sbr.rel (%p281_p9) target bundleno = 623 (0x26f), region = 48  ;;  %p325_p10 = scmp.lt.s32.totalorder (!%p281_p9), %s2434_s19, 127 }
  0x13   : > { %v475_v0 = vld [vmem:[%s4197_s3] sm:$0x7]  ;;  %vm669_vm0 = vcmask 1042432   ;;  %v474_v1 = vld [vmem:[%s4196_s2 + $0x18] sm:$0xff]  ;;  %s4210_s19 = smov (!%p325_p10, %s2434_s19), 127  ;;  %vm476_vm1 = vcmask 23552  }
  0x14   : > { %3120 = vmatprep.subr.msk.mxu1 %vm669_vm0, %v475_v0  ;;  %2790 = vmatprep.subr.msk.mxu0 %vm669_vm0, %v475_v0  ;;  %s3328_s22 = sshll.u32 %s4210_s19, 3  ;;  %v473_v5 = vld [vmem:[%s4196_s2 + $0x10] sm:$0xff]  ;;  %v472_v7 = vld [vmem:[%s4196_s2 + $0x8] sm:$0xff]  ;;  %v471_v9 = vld [vmem:[%s4196_s2] sm:$0xff]  ;;  %vm1058_vm2 = vcmask 261120  }
  0x15   : > { %3121 = vmatpush3.msk.msra.mxu1 %vm669_vm0, %v475_v0  ;;  %2791 = vmatpush3.msk.msra.mxu0 %vm669_vm0, %v475_v0  ;;  %s3334_s25 = scalar_lea.vmem %s4195_s1, %s3328_s22  ;;  %s3458_s21 = scalar_lea.vmem %s4194_s0, %s3328_s22 }
  0x16   : > { %2888 = vmatprep.subr.mxu1 %v474_v1  ;;  %v439_v2 = vld [vmem:[%s3334_s25 + $0x100] sm:$0xff]  ;;  %v440_v3 = vld [vmem:[%s3334_s25 + $0x108] sm:$0xff]  ;;  %v441_v4 = vld [vmem:[%s3334_s25 + $0x110] sm:$0xff]  ;;  %s3944_s12 = scalar_lea.vmem %s4201_s7, %s3328_s22 }
  0x17   : > { %2840 = vmatprep.mubr.msk.f32.mxu1 %vm476_vm1, %v439_v2  ;;  %v442_v6 = vld [vmem:[%s3334_s25 + $0x118] sm:$0xff]  ;;  %v443_v8 = vld [vmem:[%s3334_s25 + $0x120] sm:$0xff]  ;;  %v444_v10 = vld [vmem:[%s3334_s25 + $0x128] sm:$0xff] }
  0x18   : > { %2841 = vmatmul.mubr.msk.f32.vlgmr.msra.gmra.mxu1 %vm476_vm1, %v440_v3  ;;  %v445_v11 = vld [vmem:[%s3334_s25 + $0x130] sm:$0xff]  ;;  %v407_v12 = vld [vmem:[%s3334_s25] sm:$0xff]  ;;  %v446_v13 = vld [vmem:[%s3334_s25 + $0x138] sm:$0xff] }
  0x19   : > { %2889 = vmatpush3.msra.mxu1 %v474_v1  ;;  %2843 = vmatprep.mubr.msk.f32.mxu1 %vm476_vm1, %v441_v4  ;;  %v408_v14 = vld [vmem:[%s3334_s25 + $0x8] sm:$0xff]  ;;  %v447_v15 = vld [vmem:[%s3334_s25 + $0x140] sm:$0xff]  ;;  %v409_v16 = vld [vmem:[%s3334_s25 + $0x10] sm:$0xff] }
  0x1a   : > { %2890 = vmatprep.subr.mxu1 %v473_v5  ;;  %2792 = vmatprep.mubr.msk.f32.mxu0 %vm476_vm1, %v407_v12  ;;  %v410_v17 = vld [vmem:[%s3334_s25 + $0x18] sm:$0xff]  ;;  %v411_v18 = vld [vmem:[%s3334_s25 + $0x20] sm:$0xff]  ;;  %v448_v19 = vld [vmem:[%s3334_s25 + $0x148] sm:$0xff] }
  0x1b   : > { %2891 = vmatpush3.msra.mxu1 %v473_v5  ;;  %2793 = vmatmul.mubr.msk.f32.vlgmr.msra.gmra.mxu0 %vm476_vm1, %v408_v14  ;;  %v449_v20 = vld [vmem:[%s3334_s25 + $0x150] sm:$0xff]  ;;  %v412_v21 = vld [vmem:[%s3334_s25 + $0x28] sm:$0xff]  ;;  %v450_v23 = vld [vmem:[%s3334_s25 + $0x158] sm:$0xff] }
  0x1c   : > { %2844 = vmatmul.mubr.msk.f32.gmra.mxu1 %vm476_vm1, %v442_v6  ;;  %2892 = vmatprep.subr.mxu1 %v472_v7  ;;  %v413_v22 = vld [vmem:[%s3334_s25 + $0x30] sm:$0xff]  ;;  %v451_v24 = vld [vmem:[%s3334_s25 + $0x160] sm:$0xff]  ;;  %v414_v25 = vld [vmem:[%s3334_s25 + $0x38] sm:$0xff] }
  0x1d   : > { %2846 = vmatprep.mubr.msk.f32.mxu1 %vm476_vm1, %v443_v8  ;;  %2893 = vmatpush3.msra.mxu1 %v472_v7  ;;  %v415_v26 = vld [vmem:[%s3334_s25 + $0x40] sm:$0xff]  ;;  %v452_v27 = vld [vmem:[%s3334_s25 + $0x168] sm:$0xff]  ;;  %v453_v28 = vld [vmem:[%s3334_s25 + $0x170] sm:$0xff] }
  0x1e   : > { %2894 = vmatprep.subr.mxu1 %v471_v9  ;;  %2795 = vmatprep.mubr.msk.f32.mxu0 %vm476_vm1, %v409_v16  ;;  %v416_v29 = vld [vmem:[%s3334_s25 + $0x48] sm:$0xff]  ;;  %v417_v30 = vld [vmem:[%s3334_s25 + $0x50] sm:$0xff]  ;;  %v454_v31 = vld [vmem:[%s3334_s25 + $0x178] sm:$0xff] }
  0x1f   : > { %2895 = vmatpush3.msra.mxu1 %v471_v9  ;;  %2796 = vmatmul.mubr.msk.f32.gmra.mxu0 %vm476_vm1, %v410_v17  ;;  %v455_v32 = vld [vmem:[%s3334_s25 + $0x180] sm:$0xff]  ;;  %v418_v33 = vld [vmem:[%s3334_s25 + $0x58] sm:$0xff]  ;;  %v456_v35 = vld [vmem:[%s3334_s25 + $0x188] sm:$0xff] }
  0x20   : > { %2847 = vmatmul.mubr.msk.f32.gmra.mxu1 %vm476_vm1, %v444_v10  ;;  %2798 = vmatprep.mubr.msk.f32.mxu0 %vm476_vm1, %v411_v18  ;;  %v419_v34 = vld [vmem:[%s3334_s25 + $0x60] sm:$0xff]  ;;  %v457_v36 = vld [vmem:[%s3334_s25 + $0x190] sm:$0xff]  ;;  %v420_v37 = vld [vmem:[%s3334_s25 + $0x68] sm:$0xff] }
  0x21   : > { %2849 = vmatprep.mubr.msk.f32.mxu1 %vm476_vm1, %v445_v11  ;;  %v421_v38 = vld [vmem:[%s3334_s25 + $0x70] sm:$0xff]  ;;  %v458_v39 = vld [vmem:[%s3334_s25 + $0x198] sm:$0xff]  ;;  %v459_v40 = vld [vmem:[%s3334_s25 + $0x1a0] sm:$0xff] }
  0x22   : > { %v422_v41 = vld [vmem:[%s3334_s25 + $0x78] sm:$0xff]  ;;  %v423_v42 = vld [vmem:[%s3334_s25 + $0x80] sm:$0xff]  ;;  %v460_v43 = vld [vmem:[%s3334_s25 + $0x1a8] sm:$0xff] }
  0x23   : > { %2799 = vmatmul.mubr.msk.f32.gmra.mxu0 %vm476_vm1, %v412_v21  ;;  %v461_v44 = vld [vmem:[%s3334_s25 + $0x1b0] sm:$0xff]  ;;  %v424_v45 = vld [vmem:[%s3334_s25 + $0x88] sm:$0xff]  ;;  %v462_v47 = vld [vmem:[%s3334_s25 + $0x1b8] sm:$0xff] }
  0x24   : > { %2850 = vmatmul.mubr.msk.f32.gmra.mxu1 %vm476_vm1, %v446_v13  ;;  %2801 = vmatprep.mubr.msk.f32.mxu0 %vm476_vm1, %v413_v22  ;;  %v425_v46 = vld [vmem:[%s3334_s25 + $0x90] sm:$0xff]  ;;  %v463_v48 = vld [vmem:[%s3334_s25 + $0x1c0] sm:$0xff]  ;;  %v426_v49 = vld [vmem:[%s3334_s25 + $0x98] sm:$0xff] }
  0x25   : > { %2852 = vmatprep.mubr.msk.f32.mxu1 %vm476_vm1, %v447_v15  ;;  %v427_v50 = vld [vmem:[%s3334_s25 + $0xa0] sm:$0xff]  ;;  %v464_v51 = vld [vmem:[%s3334_s25 + $0x1c8] sm:$0xff]  ;;  %v465_v52 = vld [vmem:[%s3334_s25 + $0x1d0] sm:$0xff] }
  0x26   : > { %v428_v53 = vld [vmem:[%s3334_s25 + $0xa8] sm:$0xff]  ;;  %v429_v54 = vld [vmem:[%s3334_s25 + $0xb0] sm:$0xff]  ;;  %v466_v55 = vld [vmem:[%s3334_s25 + $0x1d8] sm:$0xff] }
  0x27   : > { %2802 = vmatmul.mubr.msk.f32.gmra.mxu0 %vm476_vm1, %v414_v25  ;;  %v467_v56 = vld [vmem:[%s3334_s25 + $0x1e0] sm:$0xff]  ;;  %v430_v57 = vld [vmem:[%s3334_s25 + $0xb8] sm:$0xff]  ;;  %v468_v59 = vld [vmem:[%s3334_s25 + $0x1e8] sm:$0xff] }
  0x28   : > { %2853 = vmatmul.mubr.msk.f32.gmra.mxu1 %vm476_vm1, %v448_v19  ;;  %2804 = vmatprep.mubr.msk.f32.mxu0 %vm476_vm1, %v415_v26  ;;  %v431_v58 = vld [vmem:[%s3334_s25 + $0xc0] sm:$0xff]  ;;  %v469_v60 = vld [vmem:[%s3334_s25 + $0x1f0] sm:$0xff]  ;;  %v432_v61 = vld [vmem:[%s3334_s25 + $0xc8] sm:$0xff] }
  0x29   : > { %2855 = vmatprep.mubr.msk.f32.mxu1 %vm476_vm1, %v449_v20  ;;  %v433_v62 = vld [vmem:[%s3334_s25 + $0xd0] sm:$0xff]  ;;  %v470_v63 = vld [vmem:[%s3334_s25 + $0x1f8] sm:$0xff]  ;;  %v343_v0 = vld [vmem:[%s3458_s21] sm:$0xff] }
  0x2a   : > { %v434_v1 = vld [vmem:[%s3334_s25 + $0xd8] sm:$0xff]  ;;  %v435_v2 = vld [vmem:[%s3334_s25 + $0xe0] sm:$0xff]  ;;  %v344_v3 = vld [vmem:[%s3458_s21 + $0x8] sm:$0xff] }
  0x2b   : > { %2805 = vmatmul.mubr.msk.f32.gmra.mxu0 %vm476_vm1, %v416_v29  ;;  %v345_v4 = vld [vmem:[%s3458_s21 + $0x10] sm:$0xff]  ;;  %v436_v5 = vld [vmem:[%s3334_s25 + $0xe8] sm:$0xff]  ;;  %v346_v7 = vld [vmem:[%s3458_s21 + $0x18] sm:$0xff] }
  0x2c   : > { %2856 = vmatmul.mubr.msk.f32.gmra.mxu1 %vm476_vm1, %v450_v23  ;;  %2807 = vmatprep.mubr.msk.f32.mxu0 %vm476_vm1, %v417_v30  ;;  %v437_v6 = vld [vmem:[%s3334_s25 + $0xf0] sm:$0xff]  ;;  %v347_v8 = vld [vmem:[%s3458_s21 + $0x20] sm:$0xff]  ;;  %v438_v9 = vld [vmem:[%s3334_s25 + $0xf8] sm:$0xff] }
  0x2d   : > { %2858 = vmatprep.mubr.msk.f32.mxu1 %vm476_vm1, %v451_v24  ;;  %v348_v10 = vld [vmem:[%s3458_s21 + $0x28] sm:$0xff]  ;;  %v349_v11 = vld [vmem:[%s3458_s21 + $0x30] sm:$0xff]  ;;  %v1786_v12 = vld [vmem:[%s4199_s5 + $0x78] sm:$0xff] }
  0x2e   : > { %v350_v13 = vld [vmem:[%s3458_s21 + $0x38] sm:$0xff]  ;;  %2992 = vmatprep.subr.mxu0 %v1786_v12  ;;  %v351_v14 = vld [vmem:[%s3458_s21 + $0x40] sm:$0xff]  ;;  %v1785_v15 = vld [vmem:[%s4199_s5 + $0x70] sm:$0xff] }
  0x2f   : > { %2808 = vmatmul.mubr.msk.f32.gmra.mxu0 %vm476_vm1, %v418_v33  ;;  %v352_v16 = vld [vmem:[%s3458_s21 + $0x48] sm:$0xff]  ;;  %v353_v17 = vld [vmem:[%s3458_s21 + $0x50] sm:$0xff]  ;;  %v354_v19 = vld [vmem:[%s3458_s21 + $0x58] sm:$0xff] }
  0x30   : > { %2859 = vmatmul.mubr.msk.f32.gmra.mxu1 %vm476_vm1, %v452_v27  ;;  %2810 = vmatprep.mubr.msk.f32.mxu0 %vm476_vm1, %v419_v34  ;;  %v1784_v18 = vld [vmem:[%s4199_s5 + $0x68] sm:$0xff]  ;;  %v355_v20 = vld [vmem:[%s3458_s21 + $0x60] sm:$0xff]  ;;  %v357_v23 = vld [vmem:[%s3458_s21 + $0x70] sm:$0xff] }
  0x31   : > { %2861 = vmatprep.mubr.msk.f32.mxu1 %vm476_vm1, %v453_v28  ;;  %2993 = vmatpush3.msra.mxu0 %v1786_v12  ;;  %v1783_v21 = vld [vmem:[%s4199_s5 + $0x60] sm:$0xff]  ;;  %v356_v22 = vld [vmem:[%s3458_s21 + $0x68] sm:$0xff]  ;;  %v1782_v24 = vld [vmem:[%s4199_s5 + $0x58] sm:$0xff] }
  0x32   : > { %2994 = vmatprep.subr.mxu0 %v1785_v15  ;;  %v358_v25 = vld [vmem:[%s3458_s21 + $0x78] sm:$0xff]  ;;  %v359_v26 = vld [vmem:[%s3458_s21 + $0x80] sm:$0xff]  ;;  %v1781_v27 = vld [vmem:[%s4199_s5 + $0x50] sm:$0xff] }
  0x33   : > { %2811 = vmatmul.mubr.msk.f32.gmra.mxu0 %vm476_vm1, %v420_v37  ;;  %v360_v28 = vld [vmem:[%s3458_s21 + $0x88] sm:$0xff]  ;;  %v361_v29 = vld [vmem:[%s3458_s21 + $0x90] sm:$0xff]  ;;  %v1779_v33 = vld [vmem:[%s4199_s5 + $0x40] sm:$0xff] }
  0x34   : > { %2862 = vmatmul.mubr.msk.f32.gmra.mxu1 %vm476_vm1, %v454_v31  ;;  %2813 = vmatprep.mubr.msk.f32.mxu0 %vm476_vm1, %v421_v38  ;;  %v1780_v30 = vld [vmem:[%s4199_s5 + $0x48] sm:$0xff]  ;;  %v362_v31 = vld [vmem:[%s3458_s21 + $0x98] sm:$0xff]  ;;  %v367_v38 = vld [vmem:[%s3458_s21 + $0xc0] sm:$0xff] }
  0x35   : > { %2864 = vmatprep.mubr.msk.f32.mxu1 %vm476_vm1, %v455_v32  ;;  %2995 = vmatpush3.msra.mxu0 %v1785_v15  ;;  %v363_v32 = vld [vmem:[%s3458_s21 + $0xa0] sm:$0xff]  ;;  %v364_v34 = vld [vmem:[%s3458_s21 + $0xa8] sm:$0xff]  ;;  %v366_v37 = vld [vmem:[%s3458_s21 + $0xb8] sm:$0xff] }
  0x36   : > { %2996 = vmatprep.subr.mxu0 %v1784_v18  ;;  %v398_v12 = vld [vmem:[%s3458_s21 + $0x1b8] sm:$0xff]  ;;  %v401_v15 = vld [vmem:[%s3458_s21 + $0x1d0] sm:$0xff] }
  0x37   : > { %2814 = vmatmul.mubr.msk.f32.gmra.mxu0 %vm476_vm1, %v422_v41  ;;  %v369_v41 = vld [vmem:[%s3458_s21 + $0xd0] sm:$0xff] }
  0x38   : > { %2865 = vmatmul.mubr.msk.f32.gmra.mxu1 %vm476_vm1, %v456_v35  ;;  %2816 = vmatprep.mubr.msk.f32.mxu0 %vm476_vm1, %v423_v42  ;;  %v365_v35 = vld [vmem:[%s3458_s21 + $0xb0] sm:$0xff]  ;;  %v1776_v42 = vld [vmem:[%s4199_s5 + $0x28] sm:$0xff] }
  0x39   : > { %2867 = vmatprep.mubr.msk.f32.mxu1 %vm476_vm1, %v457_v36  ;;  %2997 = vmatpush3.msra.mxu0 %v1784_v18  ;;  %v1778_v36 = vld [vmem:[%s4199_s5 + $0x38] sm:$0xff]  ;;  %v404_v18 = vld [vmem:[%s3458_s21 + $0x1e8] sm:$0xff] }
  0x3a   : > { %2998 = vmatprep.subr.mxu0 %v1783_v21 }
  0x3b   : > { %2817 = vmatmul.mubr.msk.f32.gmra.mxu0 %vm476_vm1, %v424_v45  ;;  %v1775_v45 = vld [vmem:[%s4199_s5 + $0x20] sm:$0xff] }
  0x3c   : > { %2868 = vmatmul.mubr.msk.f32.gmra.mxu1 %vm476_vm1, %v458_v39  ;;  %2819 = vmatprep.mubr.msk.f32.mxu0 %vm476_vm1, %v425_v46  ;;  %v1777_v39 = vld [vmem:[%s4199_s5 + $0x30] sm:$0xff]  ;;  %v372_v46 = vld [vmem:[%s3458_s21 + $0xe8] sm:$0xff] }
  0x3d   : > { %2870 = vmatprep.mubr.msk.f32.mxu1 %vm476_vm1, %v459_v40  ;;  %2999 = vmatpush3.msra.mxu0 %v1783_v21  ;;  %v368_v40 = vld [vmem:[%s3458_s21 + $0xc8] sm:$0xff] }
  0x3e   : > { %3000 = vmatprep.subr.mxu0 %v1782_v24 }
  0x3f   : > { %2820 = vmatmul.mubr.msk.f32.gmra.mxu0 %vm476_vm1, %v426_v49  ;;  %v374_v49 = vld [vmem:[%s3458_s21 + $0xf8] sm:$0xff] }
  0x40   : > { %2871 = vmatmul.mubr.msk.f32.gmra.mxu1 %vm476_vm1, %v460_v43  ;;  %2822 = vmatprep.mubr.msk.f32.mxu0 %vm476_vm1, %v427_v50  ;;  %v370_v43 = vld [vmem:[%s3458_s21 + $0xd8] sm:$0xff]  ;;  %v375_v50 = vld [vmem:[%s3458_s21 + $0x100] sm:$0xff] }
  0x41   : > { %2873 = vmatprep.mubr.msk.f32.mxu1 %vm476_vm1, %v461_v44  ;;  %3001 = vmatpush3.msra.mxu0 %v1782_v24  ;;  %v371_v44 = vld [vmem:[%s3458_s21 + $0xe0] sm:$0xff] }
  0x42   : > { %3002 = vmatprep.subr.mxu0 %v1781_v27 }
  0x43   : > { %2823 = vmatmul.mubr.msk.f32.gmra.mxu0 %vm476_vm1, %v428_v53  ;;  %v377_v53 = vld [vmem:[%s3458_s21 + $0x110] sm:$0xff] }
  0x44   : > { %2874 = vmatmul.mubr.msk.f32.gmra.mxu1 %vm476_vm1, %v462_v47  ;;  %2825 = vmatprep.mubr.msk.f32.mxu0 %vm476_vm1, %v429_v54  ;;  %v373_v47 = vld [vmem:[%s3458_s21 + $0xf0] sm:$0xff]  ;;  %v378_v54 = vld [vmem:[%s3458_s21 + $0x118] sm:$0xff] }
  0x45   : > { %2876 = vmatprep.mubr.msk.f32.mxu1 %vm476_vm1, %v463_v48  ;;  %3003 = vmatpush3.msra.mxu0 %v1781_v27  ;;  %v1774_v48 = vld [vmem:[%s4199_s5 + $0x18] sm:$0xff] }
  0x46   : > { %3004 = vmatprep.subr.mxu0 %v1780_v30 }
  0x47   : > { %2826 = vmatmul.mubr.msk.f32.gmra.mxu0 %vm476_vm1, %v430_v57  ;;  %v1772_v57 = vld [vmem:[%s4199_s5 + $0x8] sm:$0xff] }
  0x48   : > { %2877 = vmatmul.mubr.msk.f32.gmra.mxu1 %vm476_vm1, %v464_v51  ;;  %2828 = vmatprep.mubr.msk.f32.mxu0 %vm476_vm1, %v431_v58  ;;  %v1773_v51 = vld [vmem:[%s4199_s5 + $0x10] sm:$0xff] }
  0x49   : > { %2879 = vmatprep.mubr.msk.f32.mxu1 %vm476_vm1, %v465_v52  ;;  %3005 = vmatpush3.msra.mxu0 %v1780_v30  ;;  %v376_v52 = vld [vmem:[%s3458_s21 + $0x108] sm:$0xff]  ;;  %v381_v58 = vld [vmem:[%s3458_s21 + $0x130] sm:$0xff] }
  0x4a   : > { %3006 = vmatprep.subr.mxu0 %v1779_v33 }
  0x4b   : > { %2829 = vmatmul.mubr.msk.f32.gmra.mxu0 %vm476_vm1, %v432_v61  ;;  %v383_v61 = vld [vmem:[%s3458_s21 + $0x140] sm:$0xff] }
  0x4c   : > { %2880 = vmatmul.mubr.msk.f32.gmra.mxu1 %vm476_vm1, %v466_v55  ;;  %2831 = vmatprep.mubr.msk.f32.mxu0 %vm476_vm1, %v433_v62  ;;  %v379_v55 = vld [vmem:[%s3458_s21 + $0x120] sm:$0xff]  ;;  %v384_v62 = vld [vmem:[%s3458_s21 + $0x148] sm:$0xff] }
  0x4d   : > { %2882 = vmatprep.mubr.msk.f32.mxu1 %vm476_vm1, %v467_v56  ;;  %3007 = vmatpush3.msra.mxu0 %v1779_v33  ;;  %v380_v56 = vld [vmem:[%s3458_s21 + $0x128] sm:$0xff] }
  0x4e   : > { %3008 = vmatprep.subr.mxu0 %v1778_v36 }
  0x4f   : > { %2832 = vmatmul.mubr.msk.f32.gmra.mxu0 %vm476_vm1, %v434_v1  ;;  %v387_v1 = vld [vmem:[%s3458_s21 + $0x160] sm:$0xff] }
  0x50   : > { %2883 = vmatmul.mubr.msk.f32.gmra.mxu1 %vm476_vm1, %v468_v59  ;;  %2834 = vmatprep.mubr.msk.f32.mxu0 %vm476_vm1, %v435_v2  ;;  %v1771_v59 = vld [vmem:[%s4199_s5] sm:$0xff]  ;;  %v388_v2 = vld [vmem:[%s3458_s21 + $0x168] sm:$0xff] }
  0x51   : > { %2885 = vmatprep.mubr.msk.f32.mxu1 %vm476_vm1, %v469_v60  ;;  %3009 = vmatpush3.msra.mxu0 %v1778_v36  ;;  %v382_v60 = vld [vmem:[%s3458_s21 + $0x138] sm:$0xff] }
  0x52   : > { %3010 = vmatprep.subr.mxu0 %v1777_v39 }
  0x53   : > { %2835 = vmatmul.mubr.msk.f32.gmra.mxu0 %vm476_vm1, %v436_v5  ;;  %v391_v5 = vld [vmem:[%s3458_s21 + $0x180] sm:$0xff] }
  0x54   : > { %2886 = vmatmul.mubr.msk.f32.gmra.mxu1 %vm476_vm1, %v470_v63  ;;  %2837 = vmatprep.mubr.msk.f32.mxu0 %vm476_vm1, %v437_v6  ;;  %v385_v63 = vld [vmem:[%s3458_s21 + $0x150] sm:$0xff]  ;;  %v392_v6 = vld [vmem:[%s3458_s21 + $0x188] sm:$0xff] }
  0x55   : > { %2896 = vmatprep.mubr.msk.f32.mxu1 %vm1058_vm2, %v343_v0  ;;  %3011 = vmatpush3.msra.mxu0 %v1777_v39  ;;  %v386_v0 = vld [vmem:[%s3458_s21 + $0x158] sm:$0xff] }
  0x56   : > { %3012 = vmatprep.subr.mxu0 %v1776_v42 }
  0x57   : > { %2838 = vmatmul.mubr.msk.f32.gmra.mxu0 %vm476_vm1, %v438_v9  ;;  %v395_v9 = vld [vmem:[%s3458_s21 + $0x1a0] sm:$0xff] }
  0x58   : > { %2897 = vmatmul.mubr.msk.f32.vlgmr.msra.gmra.mxu1 %vm1058_vm2, %v344_v3  ;;  %3013 = vmatpush3.msra.mxu0 %v1776_v42  ;;  %v389_v3 = vld [vmem:[%s3458_s21 + $0x170] sm:$0xff] }
  0x59   : > { %2899 = vmatprep.mubr.msk.f32.mxu1 %vm1058_vm2, %v345_v4  ;;  %3014 = vmatprep.subr.mxu0 %v1775_v45  ;;  %v390_v4 = vld [vmem:[%s3458_s21 + $0x178] sm:$0xff] }
  0x5a   : > { %3015 = vmatpush3.msra.mxu0 %v1775_v45 }
  0x5b   : > { %3016 = vmatprep.subr.mxu0 %v1774_v48 }
  0x5c   : > { %2900 = vmatmul.mubr.msk.f32.gmra.mxu1 %vm1058_vm2, %v346_v7  ;;  %3017 = vmatpush3.msra.mxu0 %v1774_v48  ;;  %v393_v7 = vld [vmem:[%s3458_s21 + $0x190] sm:$0xff] }
  0x5d   : > { %2902 = vmatprep.mubr.msk.f32.mxu1 %vm1058_vm2, %v347_v8  ;;  %3018 = vmatprep.subr.mxu0 %v1773_v51  ;;  %v394_v8 = vld [vmem:[%s3458_s21 + $0x198] sm:$0xff] }
  0x5e   : > { %3019 = vmatpush3.msra.mxu0 %v1773_v51 }
  0x5f   : > { %3020 = vmatprep.subr.mxu0 %v1772_v57 }
  0x60   : > { %2903 = vmatmul.mubr.msk.f32.gmra.mxu1 %vm1058_vm2, %v348_v10  ;;  %3021 = vmatpush3.msra.mxu0 %v1772_v57  ;;  %v396_v10 = vld [vmem:[%s3458_s21 + $0x1a8] sm:$0xff] }
  0x61   : > { %2905 = vmatprep.mubr.msk.f32.mxu1 %vm1058_vm2, %v349_v11  ;;  %3022 = vmatprep.subr.mxu0 %v1771_v59  ;;  %v397_v11 = vld [vmem:[%s3458_s21 + $0x1b0] sm:$0xff] }
  0x62   : > { %3023 = vmatpush3.msra.mxu0 %v1771_v59 }
  0x64   : > { %2906 = vmatmul.mubr.msk.f32.gmra.mxu1 %vm1058_vm2, %v350_v13  ;;  %v399_v13 = vld [vmem:[%s3458_s21 + $0x1c0] sm:$0xff] }
  0x65   : > { %2908 = vmatprep.mubr.msk.f32.mxu1 %vm1058_vm2, %v351_v14  ;;  %v400_v14 = vld [vmem:[%s3458_s21 + $0x1c8] sm:$0xff] }
  0x68   : > { %2909 = vmatmul.mubr.msk.f32.gmra.mxu1 %vm1058_vm2, %v352_v16  ;;  %v402_v16 = vld [vmem:[%s3458_s21 + $0x1d8] sm:$0xff] }
  0x69   : > { %2911 = vmatprep.mubr.msk.f32.mxu1 %vm1058_vm2, %v353_v17  ;;  %v403_v17 = vld [vmem:[%s3458_s21 + $0x1e0] sm:$0xff] }
  0x6c   : > { %2912 = vmatmul.mubr.msk.f32.gmra.mxu1 %vm1058_vm2, %v354_v19  ;;  %v405_v19 = vld [vmem:[%s3458_s21 + $0x1f0] sm:$0xff] }
  0x6d   : > { %2914 = vmatprep.mubr.msk.f32.mxu1 %vm1058_vm2, %v355_v20  ;;  %v406_v20 = vld [vmem:[%s3458_s21 + $0x1f8] sm:$0xff]  ;;  %s321_s21 = sand.u32 1, %s3215_s28  }
  0x6e   : > { %s2433_s24 = sshll.u32 %s321_s21, 9  ;;  %s3966_s9 = scalar_lea.sflag [#allocation3], %s321_s21 }
  0x6f   : > { %s3755_s25 = scalar_lea.vmem [#allocation2], %s2433_s24  ;;  %s3956_s24 = scalar_lea.hbm %s4202_s8, %s2576_s18 }
  0x70   : > { %2915 = vmatmul.mubr.msk.f32.gmra.mxu1 %vm1058_vm2, %v356_v22  ;;  %s2330_s19 = sshll.u32 %s3755_s25, 4  ;;  %s3959_s19 = int_to_ptr.vmem [resolvable:$true] %s2330_s19 }
  0x71   : > { %2917 = vmatprep.mubr.msk.f32.mxu1 %vm1058_vm2, %v357_v23  ;;  %s3163_s22 = scalar_lea.vmem %s3959_s19, 8192 }
  0x72   : > { %p3164_p11 = scmp.ne.s32.totalorder %s3959_s19, %s3163_s22 }
  0x74   : > { %2918 = vmatmul.mubr.msk.f32.gmra.mxu1 %vm1058_vm2, %v358_v25  ;;  %p3165_p12 = pnand %p3164_p11, %p3311_p5 }
  0x75   : > { %2920 = vmatprep.mubr.msk.f32.mxu1 %vm1058_vm2, %v359_v26 }
  0x76   : > { %p3166_p13 = pneg %p3165_p12 }
  0x78   : > { %2921 = vmatmul.mubr.msk.f32.gmra.mxu1 %vm1058_vm2, %v360_v28 }
  0x79   : > { %2923 = vmatprep.mubr.msk.f32.mxu1 %vm1058_vm2, %v361_v29 }
  0x7c   : > { %2924 = vmatmul.mubr.msk.f32.gmra.mxu1 %vm1058_vm2, %v362_v31 }
  0x7d   : > { %2926 = vmatprep.mubr.msk.f32.mxu1 %vm1058_vm2, %v363_v32 }
  0x80   : > { %2927 = vmatmul.mubr.msk.f32.gmra.mxu1 %vm1058_vm2, %v364_v34 }
  0x81   : > { %2929 = vmatprep.mubr.msk.f32.mxu1 %vm1058_vm2, %v365_v35 }
  0x84   : > { %2930 = vmatmul.mubr.msk.f32.gmra.mxu1 %vm1058_vm2, %v366_v37 }
  0x85   : > { %2932 = vmatprep.mubr.msk.f32.mxu1 %vm1058_vm2, %v367_v38 }
  0x88   : > { %2933 = vmatmul.mubr.msk.f32.gmra.mxu1 %vm1058_vm2, %v368_v40 }
  0x89   : > { %2935 = vmatprep.mubr.msk.f32.mxu1 %vm1058_vm2, %v369_v41 }
  0x8c   : > { %2936 = vmatmul.mubr.msk.f32.gmra.mxu1 %vm1058_vm2, %v370_v43 }
  0x8d   : > { %2938 = vmatprep.mubr.msk.f32.mxu1 %vm1058_vm2, %v371_v44 }
  0x90   : > { %2939 = vmatmul.mubr.msk.f32.gmra.mxu1 %vm1058_vm2, %v372_v46 }
  0x91   : > { %2941 = vmatprep.mubr.msk.f32.mxu1 %vm1058_vm2, %v373_v47 }
  0x94   : > { %2942 = vmatmul.mubr.msk.f32.gmra.mxu1 %vm1058_vm2, %v374_v49 }
  0x95   : > { %2944 = vmatprep.mubr.msk.f32.mxu1 %vm1058_vm2, %v375_v50 }
  0x98   : > { %2945 = vmatmul.mubr.msk.f32.gmra.mxu1 %vm1058_vm2, %v376_v52 }
  0x99   : > { %2947 = vmatprep.mubr.msk.f32.mxu1 %vm1058_vm2, %v377_v53 }
  0x9c   : > { %2948 = vmatmul.mubr.msk.f32.gmra.mxu1 %vm1058_vm2, %v378_v54 }
  0x9d   : > { %2950 = vmatprep.mubr.msk.f32.mxu1 %vm1058_vm2, %v379_v55 }
  0xa0   : > { %2951 = vmatmul.mubr.msk.f32.gmra.mxu1 %vm1058_vm2, %v380_v56 }
  0xa1   : > { %2953 = vmatprep.mubr.msk.f32.mxu1 %vm1058_vm2, %v381_v58 }
  0xa4   : > { %2954 = vmatmul.mubr.msk.f32.gmra.mxu1 %vm1058_vm2, %v382_v60 }
  0xa5   : > { %2956 = vmatprep.mubr.msk.f32.mxu1 %vm1058_vm2, %v383_v61 }
  0xa8   : > { %2957 = vmatmul.mubr.msk.f32.gmra.mxu1 %vm1058_vm2, %v384_v62 }
  0xa9   : > { %2959 = vmatprep.mubr.msk.f32.mxu1 %vm1058_vm2, %v385_v63 }
  0xac   : > { %2960 = vmatmul.mubr.msk.f32.gmra.mxu1 %vm1058_vm2, %v386_v0 }
  0xad   : > { %2962 = vmatprep.mubr.msk.f32.mxu1 %vm1058_vm2, %v387_v1 }
  0xb0   : > { %2963 = vmatmul.mubr.msk.f32.gmra.mxu1 %vm1058_vm2, %v388_v2 }
  0xb1   : > { %2965 = vmatprep.mubr.msk.f32.mxu1 %vm1058_vm2, %v389_v3 }
  0xb4   : > { %2966 = vmatmul.mubr.msk.f32.gmra.mxu1 %vm1058_vm2, %v390_v4 }
  0xb5   : > { %2968 = vmatprep.mubr.msk.f32.mxu1 %vm1058_vm2, %v391_v5 }
  0xb8   : > { %2969 = vmatmul.mubr.msk.f32.gmra.mxu1 %vm1058_vm2, %v392_v6  ;;  %v3745_v6 = vld [vmem:[%s4198_s4] ss:$0 sm:$0xff] }
  0xb9   : > { %2971 = vmatprep.mubr.msk.f32.mxu1 %vm1058_vm2, %v393_v7 }
  0xbc   : > { %2972 = vmatmul.mubr.msk.f32.gmra.mxu1 %vm1058_vm2, %v394_v8 }
  0xbd   : > { %2974 = vmatprep.mubr.msk.f32.mxu1 %vm1058_vm2, %v395_v9 }
  0xc0   : > { %2975 = vmatmul.mubr.msk.f32.gmra.mxu1 %vm1058_vm2, %v396_v10 }
  0xc1   : > { %2977 = vmatprep.mubr.msk.f32.mxu1 %vm1058_vm2, %v397_v11 }
  0xc4   : > { %2978 = vmatmul.mubr.msk.f32.gmra.mxu1 %vm1058_vm2, %v398_v12 }
  0xc5   : > { %2980 = vmatprep.mubr.msk.f32.mxu1 %vm1058_vm2, %v399_v13 }
  0xc8   : > { %2981 = vmatmul.mubr.msk.f32.gmra.mxu1 %vm1058_vm2, %v400_v14 }
  0xc9   : > { %2983 = vmatprep.mubr.msk.f32.mxu1 %vm1058_vm2, %v401_v15 }
  0xcc   : > { %2984 = vmatmul.mubr.msk.f32.gmra.mxu1 %vm1058_vm2, %v402_v16 }
  0xcd   : > { %2986 = vmatprep.mubr.msk.f32.mxu1 %vm1058_vm2, %v403_v17 }
  0xd0   : > { %2987 = vmatmul.mubr.msk.f32.gmra.mxu1 %vm1058_vm2, %v404_v18 }
  0xd1   : > { %2989 = vmatprep.mubr.msk.f32.mxu1 %vm1058_vm2, %v405_v19 }
  0xd4   : > { %2990 = vmatmul.mubr.msk.f32.gmra.mxu1 %vm1058_vm2, %v406_v20 }
  0xd8   : > { %v3655_v21 = vpop.f32.mrf.mxu1 }
  0xda   : > { %v3657_v22 = vpop.f32.mrf.mxu1 }
  0xdb   : > { %v2794_v27 = vpop.f32.mrf.mxu0 }
  0xdc   : > { %v3659_v23 = vpop.f32.mrf.mxu1 }
  0xdd   : > { %v739_v29 = vpop.f32.mrf.mxu0 }
  0xde   : > { %v3661_v24 = vpop.f32.mrf.mxu1 }
  0xdf   : > { %v2797_v31 = vpop.f32.mrf.mxu0 }
  0xe0   : > { %v3663_v25 = vpop.f32.mrf.mxu1 }
  0xe1   : > { %v749_v33 = vpop.f32.mrf.mxu0 }
  0xe2   : > { %v3665_v26 = vpop.f32.mrf.mxu1 }
  0xe3   : > { %v2800_v35 = vpop.f32.mrf.mxu0 }
  0xe4   : > { %v3667_v28 = vpop.f32.mrf.mxu1 }
  0xe5   : > { %v3679_v38 = vpop.f32.mrf.mxu0 }
  0xe6   : > { %v3669_v30 = vpop.f32.mrf.mxu1 }
  0xe7   : > { %v3685_v41 = vpop.f32.mrf.mxu0 }
  0xe8   : > { %v3671_v32 = vpop.f32.mrf.mxu1 }
  0xe9   : > { %v3691_v44 = vpop.f32.mrf.mxu0 }
  0xea   : > { %v3673_v34 = vpop.f32.mrf.mxu1 }
  0xeb   : > { %v3697_v47 = vpop.f32.mrf.mxu0 }
  0xec   : > { %v3675_v36 = vpop.f32.mrf.mxu1 }
  0xed   : > { %v3703_v50 = vpop.f32.mrf.mxu0 }
  0xee   : > { %v3677_v37 = vpop.f32.mrf.mxu1 }
  0xef   : > { %v3709_v53 = vpop.f32.mrf.mxu0 }
  0xf0   : > { %v3681_v39 = vpop.f32.mrf.mxu1 }
  0xf1   : > { %v3715_v56 = vpop.f32.mrf.mxu0 }
  0xf2   : > { %v3683_v40 = vpop.f32.mrf.mxu1 }
  0xf3   : > { %v3721_v59 = vpop.f32.mrf.mxu0 }
  0xf4   : > { %v3687_v42 = vpop.f32.mrf.mxu1 }
  0xf5   : > { %v3727_v62 = vpop.f32.mrf.mxu0 }
  0xf6   : > { %v3689_v43 = vpop.f32.mrf.mxu1 }
  0xf7   : > { %v3733_v1 = vpop.f32.mrf.mxu0 }
  0xf8   : > { %v3693_v45 = vpop.f32.mrf.mxu1 }
  0xf9   : > { %v3740_v4 = vpop.f32.mrf.mxu0 }
  0xfa   : > { %v3695_v46 = vpop.f32.mrf.mxu1 }
  0xfb   : > { %v3749_v9 = vpop.f32.mrf.mxu0 }
  0xfc   : > { %v3699_v48 = vpop.f32.mrf.mxu1 }
  0xfd   : > { %v3753_v17 = vpop.f32.mrf.mxu0 }
  0xfe   : > { %v3701_v49 = vpop.f32.mrf.mxu1 }
 0x100   : > { %v3705_v51 = vpop.f32.mrf.mxu1 }
 0x102   : > { %v3707_v52 = vpop.f32.mrf.mxu1 }
 0x104   : > { %v3711_v54 = vpop.f32.mrf.mxu1 }
 0x106   : > { %v3713_v55 = vpop.f32.mrf.mxu1 }
 0x108   : > { %v3717_v57 = vpop.f32.mrf.mxu1 }
 0x10a   : > { %v3719_v58 = vpop.f32.mrf.mxu1 }
 0x10c   : > { %v3723_v60 = vpop.f32.mrf.mxu1 }
 0x10e   : > { %v3725_v61 = vpop.f32.mrf.mxu1 }
 0x110   : > { %v3729_v63 = vpop.f32.mrf.mxu1 }
 0x112   : > { %v3731_v0 = vpop.f32.mrf.mxu1 }
 0x114   : > { %v3735_v2 = vpop.f32.mrf.mxu1 }
 0x116   : > { %v3737_v3 = vpop.f32.mrf.mxu1 }
 0x118   : > { %v2898_v5 = vpop.f32.mrf.mxu1 }
 0x119   : > { %v1323_v7 = vadd.f32 %v2898_v5, %v2794_v27 }
 0x11a   : > { %v1317_v8 = vpop.f32.mrf.mxu1 }
 0x11b   : > { %v1644_v10 = vadd.f32 %v3745_v6, %v1323_v7  ;;  %v1318_v11 = vadd.f32 %v1317_v8, %v739_v29  ;;  %v3761_v8 = vpop.f32.mrf.mxu0 }
 0x11c   : > { %v2901_v12 = vpop.f32.mrf.mxu1 }
 0x11d   : > { %v1708_v13 = vmax.f32 %v1644_v10, 0.0  ;;  %v1643_v14 = vadd.f32 %v3745_v6, %v1318_v11  ;;  %v1333_v15 = vadd.f32 %v2901_v12, %v2797_v31 }
 0x11e   : > { %v1327_v16 = vpop.f32.mrf.mxu1 }
 0x11f   : > { %2180 = vst [vmem:[%s3755_s25 + $0x8] sm:$0xff] %v1708_v13  ;;  %v1707_v18 = vmax.f32 %v1643_v14, 0.0  ;;  %v1646_v19 = vadd.f32 %v3745_v6, %v1333_v15  ;;  %v1328_v20 = vadd.f32 %v1327_v16, %v749_v33 }
 0x120   : > { %v2904_v27 = vpop.f32.mrf.mxu1 }
 0x121   : > { %2179 = vst [vmem:[%s3755_s25] sm:$0xff] %v1707_v18  ;;  %v1710_v29 = vmax.f32 %v1646_v19, 0.0  ;;  %v1645_v5 = vadd.f32 %v3745_v6, %v1328_v20  ;;  %v1343_v31 = vadd.f32 %v2904_v27, %v2800_v35  ;;  %3024 = vmatprep.mubr.f32.mxu0 %v1707_v18 }
 0x122   : > { %v1337_v7 = vpop.f32.mrf.mxu1  ;;  %3025 = vmatmul.mubr.f32.vlgmr.msra.gmra.mxu0 %v1708_v13  ;;  %v3769_v13 = vpop.f32.mrf.mxu0 }
 0x123   : > { %2182 = vst [vmem:[%s3755_s25 + $0x18] sm:$0xff] %v1710_v29  ;;  %v1709_v10 = vmax.f32 %v1645_v5, 0.0  ;;  %v1648_v11 = vadd.f32 %v3745_v6, %v1343_v31  ;;  %v1338_v12 = vadd.f32 %v1337_v7, %v3679_v38 }
 0x124   : > { %v2907_v33 = vpop.f32.mrf.mxu1 }
 0x125   : > { %2181 = vst [vmem:[%s3755_s25 + $0x10] sm:$0xff] %v1709_v10  ;;  %v1712_v14 = vmax.f32 %v1648_v11, 0.0  ;;  %v1647_v15 = vadd.f32 %v3745_v6, %v1338_v12  ;;  %v1353_v35 = vadd.f32 %v2907_v33, %v3685_v41  ;;  %3027 = vmatprep.mubr.f32.mxu0 %v1709_v10 }
 0x126   : > { %v1347_v16 = vpop.f32.mrf.mxu1  ;;  %3028 = vmatmul.mubr.f32.gmra.mxu0 %v1710_v29  ;;  %v3777_v29 = vpop.f32.mrf.mxu0 }
 0x127   : > { %2184 = vst [vmem:[%s3755_s25 + $0x28] sm:$0xff] %v1712_v14  ;;  %v1711_v18 = vmax.f32 %v1647_v15, 0.0  ;;  %v1650_v19 = vadd.f32 %v3745_v6, %v1353_v35  ;;  %v1348_v38 = vadd.f32 %v1347_v16, %v3691_v44 }
 0x128   : > { %v2910_v20 = vpop.f32.mrf.mxu1 }
 0x129   : > { %2183 = vst [vmem:[%s3755_s25 + $0x20] sm:$0xff] %v1711_v18  ;;  %v1714_v27 = vmax.f32 %v1650_v19, 0.0  ;;  %v1649_v5 = vadd.f32 %v3745_v6, %v1348_v38  ;;  %v1363_v41 = vadd.f32 %v2910_v20, %v3697_v47  ;;  %3030 = vmatprep.mubr.f32.mxu0 %v1711_v18 }
 0x12a   : > { %v1357_v31 = vpop.f32.mrf.mxu1  ;;  %3031 = vmatmul.mubr.f32.gmra.mxu0 %v1712_v14  ;;  %v3785_v14 = vpop.f32.mrf.mxu0 }
 0x12b   : > { %2186 = vst [vmem:[%s3755_s25 + $0x38] sm:$0xff] %v1714_v27  ;;  %v1713_v7 = vmax.f32 %v1649_v5, 0.0  ;;  %v1652_v10 = vadd.f32 %v3745_v6, %v1363_v41  ;;  %v1358_v44 = vadd.f32 %v1357_v31, %v3703_v50 }
 0x12c   : > { %v2913_v11 = vpop.f32.mrf.mxu1 }
 0x12d   : > { %2185 = vst [vmem:[%s3755_s25 + $0x30] sm:$0xff] %v1713_v7  ;;  %v1716_v12 = vmax.f32 %v1652_v10, 0.0  ;;  %v1651_v33 = vadd.f32 %v3745_v6, %v1358_v44  ;;  %v1373_v47 = vadd.f32 %v2913_v11, %v3709_v53  ;;  %3033 = vmatprep.mubr.f32.mxu0 %v1713_v7 }
 0x12e   : > { %v1367_v15 = vpop.f32.mrf.mxu1  ;;  %3034 = vmatmul.mubr.f32.gmra.mxu0 %v1714_v27  ;;  %v2827_v27 = vpop.f32.mrf.mxu0 }
 0x12f   : > { %2188 = vst [vmem:[%s3755_s25 + $0x48] sm:$0xff] %v1716_v12  ;;  %v1715_v35 = vmax.f32 %v1651_v33, 0.0  ;;  %v1654_v16 = vadd.f32 %v3745_v6, %v1373_v47  ;;  %v1368_v50 = vadd.f32 %v1367_v15, %v3715_v56 }
 0x130   : > { %v2916_v18 = vpop.f32.mrf.mxu1  ;;  %v849_v11 = vpop.f32.mrf.mxu0 }
 0x131   : > { %2187 = vst [vmem:[%s3755_s25 + $0x40] sm:$0xff] %v1715_v35  ;;  %v1718_v19 = vmax.f32 %v1654_v16, 0.0  ;;  %v1653_v38 = vadd.f32 %v3745_v6, %v1368_v50  ;;  %v1383_v53 = vadd.f32 %v2916_v18, %v3721_v59  ;;  %3036 = vmatprep.mubr.f32.mxu0 %v1715_v35 }
 0x132   : > { %v1377_v20 = vpop.f32.mrf.mxu1  ;;  %3037 = vmatmul.mubr.f32.gmra.mxu0 %v1716_v12  ;;  %v2830_v50 = vpop.f32.mrf.mxu0 }
 0x133   : > { %2190 = vst [vmem:[%s3755_s25 + $0x58] sm:$0xff] %v1718_v19  ;;  %v1717_v5 = vmax.f32 %v1653_v38, 0.0  ;;  %v1656_v41 = vadd.f32 %v3745_v6, %v1383_v53  ;;  %v1378_v31 = vadd.f32 %v1377_v20, %v3727_v62 }
 0x134   : > { %v2919_v56 = vpop.f32.mrf.mxu1 }
 0x135   : > { %2189 = vst [vmem:[%s3755_s25 + $0x50] sm:$0xff] %v1717_v5  ;;  %v1720_v7 = vmax.f32 %v1656_v41, 0.0  ;;  %v1655_v10 = vadd.f32 %v3745_v6, %v1378_v31  ;;  %v1393_v44 = vadd.f32 %v2919_v56, %v3733_v1  ;;  %3039 = vmatprep.mubr.f32.mxu0 %v1717_v5  ;;  %v859_v41 = vpop.f32.mrf.mxu0 }
 0x136   : > { %v1387_v59 = vpop.f32.mrf.mxu1  ;;  %3040 = vmatmul.mubr.f32.gmra.mxu0 %v1718_v19 }
 0x137   : > { %2192 = vst [vmem:[%s3755_s25 + $0x68] sm:$0xff] %v1720_v7  ;;  %v1719_v12 = vmax.f32 %v1655_v10, 0.0  ;;  %v1658_v33 = vadd.f32 %v3745_v6, %v1393_v44  ;;  %v1388_v47 = vadd.f32 %v1387_v59, %v3740_v4 }
 0x138   : > { %v2922_v62 = vpop.f32.mrf.mxu1 }
 0x139   : > { %2191 = vst [vmem:[%s3755_s25 + $0x60] sm:$0xff] %v1719_v12  ;;  %v1722_v15 = vmax.f32 %v1658_v33, 0.0  ;;  %v1657_v35 = vadd.f32 %v3745_v6, %v1388_v47  ;;  %v1403_v16 = vadd.f32 %v2922_v62, %v3749_v9  ;;  %3042 = vmatprep.mubr.f32.mxu0 %v1719_v12  ;;  %v2833_v12 = vpop.f32.mrf.mxu0 }
 0x13a   : > { %v1397_v1 = vpop.f32.mrf.mxu1  ;;  %3043 = vmatmul.mubr.f32.gmra.mxu0 %v1720_v7 }
 0x13b   : > { %2194 = vst [vmem:[%s3755_s25 + $0x78] sm:$0xff] %v1722_v15  ;;  %v1721_v18 = vmax.f32 %v1657_v35, 0.0  ;;  %v1660_v19 = vadd.f32 %v3745_v6, %v1403_v16  ;;  %v1398_v38 = vadd.f32 %v1397_v1, %v3753_v17  ;;  %v869_v1 = vpop.f32.mrf.mxu0 }
 0x13c   : > { %v2925_v4 = vpop.f32.mrf.mxu1 }
 0x13d   : > { %2193 = vst [vmem:[%s3755_s25 + $0x70] sm:$0xff] %v1721_v18  ;;  %v1724_v53 = vmax.f32 %v1660_v19, 0.0  ;;  %v1659_v20 = vadd.f32 %v3745_v6, %v1398_v38  ;;  %v1413_v5 = vadd.f32 %v2925_v4, %v3761_v8  ;;  %3045 = vmatprep.mubr.f32.mxu0 %v1721_v18 }
 0x13e   : > { %v1407_v9 = vpop.f32.mrf.mxu1  ;;  %3046 = vmatmul.mubr.f32.gmra.mxu0 %v1722_v15 }
 0x13f   : > { %2196 = vst [vmem:[%s3755_s25 + $0x88] sm:$0xff] %v1724_v53  ;;  %v1723_v31 = vmax.f32 %v1659_v20, 0.0  ;;  %v1662_v56 = vadd.f32 %v3745_v6, %v1413_v5  ;;  %v1408_v7 = vadd.f32 %v1407_v9, %v3769_v13 }
 0x140   : > { %v2928_v17 = vpop.f32.mrf.mxu1 }
 0x141   : > { %2195 = vst [vmem:[%s3755_s25 + $0x80] sm:$0xff] %v1723_v31  ;;  %v1726_v10 = vmax.f32 %v1662_v56, 0.0  ;;  %v1661_v44 = vadd.f32 %v3745_v6, %v1408_v7  ;;  %v1423_v59 = vadd.f32 %v2928_v17, %v3777_v29  ;;  %3048 = vmatprep.mubr.f32.mxu0 %v1723_v31 }
 0x142   : > { %v1417_v8 = vpop.f32.mrf.mxu1  ;;  %3049 = vmatmul.mubr.f32.gmra.mxu0 %v1724_v53 }
 0x143   : > { %2198 = vst [vmem:[%s3755_s25 + $0x98] sm:$0xff] %v1726_v10  ;;  %v1725_v33 = vmax.f32 %v1661_v44, 0.0  ;;  %v1664_v47 = vadd.f32 %v3745_v6, %v1423_v59  ;;  %v1418_v62 = vadd.f32 %v1417_v8, %v3785_v14 }
 0x144   : > { %v2931_v13 = vpop.f32.mrf.mxu1 }
 0x145   : > { %2197 = vst [vmem:[%s3755_s25 + $0x90] sm:$0xff] %v1725_v33  ;;  %v1728_v15 = vmax.f32 %v1664_v47, 0.0  ;;  %v1663_v35 = vadd.f32 %v3745_v6, %v1418_v62  ;;  %v1433_v16 = vadd.f32 %v2931_v13, %v2827_v27  ;;  %3051 = vmatprep.mubr.f32.mxu0 %v1725_v33  ;;  %v2836_v27 = vpop.f32.mrf.mxu0 }
 0x146   : > { %v1427_v29 = vpop.f32.mrf.mxu1  ;;  %3052 = vmatmul.mubr.f32.gmra.mxu0 %v1726_v10 }
 0x147   : > { %2200 = vst [vmem:[%s3755_s25 + $0xa8] sm:$0xff] %v1728_v15  ;;  %v1727_v18 = vmax.f32 %v1663_v35, 0.0  ;;  %v1666_v19 = vadd.f32 %v3745_v6, %v1433_v16  ;;  %v1428_v38 = vadd.f32 %v1427_v29, %v849_v11 }
 0x148   : > { %v2934_v4 = vpop.f32.mrf.mxu1 }
 0x149   : > { %2199 = vst [vmem:[%s3755_s25 + $0xa0] sm:$0xff] %v1727_v18  ;;  %v1730_v14 = vmax.f32 %v1666_v19, 0.0  ;;  %v1665_v53 = vadd.f32 %v3745_v6, %v1428_v38  ;;  %v1443_v20 = vadd.f32 %v2934_v4, %v2830_v50  ;;  %3054 = vmatprep.mubr.f32.mxu0 %v1727_v18  ;;  %v879_v50 = vpop.f32.mrf.mxu0 }
 0x14a   : > { %v1437_v5 = vpop.f32.mrf.mxu1  ;;  %3055 = vmatmul.mubr.f32.gmra.mxu0 %v1728_v15 }
 0x14b   : > { %2202 = vst [vmem:[%s3755_s25 + $0xb8] sm:$0xff] %v1730_v14  ;;  %v1729_v9 = vmax.f32 %v1665_v53, 0.0  ;;  %v1668_v31 = vadd.f32 %v3745_v6, %v1443_v20  ;;  %v1438_v56 = vadd.f32 %v1437_v5, %v859_v41  ;;  %v2839_v15 = vpop.f32.mrf.mxu0 }
 0x14c   : > { %v2937_v7 = vpop.f32.mrf.mxu1 }
 0x14d   : > { %2201 = vst [vmem:[%s3755_s25 + $0xb0] sm:$0xff] %v1729_v9  ;;  %v1732_v11 = vmax.f32 %v1668_v31, 0.0  ;;  %v1667_v17 = vadd.f32 %v3745_v6, %v1438_v56  ;;  %v1453_v10 = vadd.f32 %v2937_v7, %v2833_v12  ;;  %3057 = vmatprep.mubr.f32.mxu0 %v1729_v9  ;;  %v889_v4 = vpop.f32.mrf.mxu0 }
 0x14e   : > { %v1447_v44 = vpop.f32.mrf.mxu1  ;;  %3058 = vmatmul.mubr.f32.gmra.mxu0 %v1730_v14 }
 0x14f   : > { %2204 = vst [vmem:[%s3755_s25 + $0xc8] sm:$0xff] %v1732_v11  ;;  %v1731_v59 = vmax.f32 %v1667_v17, 0.0  ;;  %v1670_v8 = vadd.f32 %v3745_v6, %v1453_v10  ;;  %v1448_v33 = vadd.f32 %v1447_v44, %v869_v1 }
 0x150   : > { %v2940_v47 = vpop.f32.mrf.mxu1 }
 0x151   : > { %2203 = vst [vmem:[%s3755_s25 + $0xc0] sm:$0xff] %v1731_v59  ;;  %v1734_v41 = vmax.f32 %v1670_v8, 0.0  ;;  %v1669_v62 = vadd.f32 %v3745_v6, %v1448_v33  ;;  %v1463_v13 = vadd.f32 %v2940_v47, %v2836_v27  ;;  %3060 = vmatprep.mubr.f32.mxu0 %v1731_v59 }
 0x152   : > { %v1457_v12 = vpop.f32.mrf.mxu1  ;;  %3061 = vmatmul.mubr.f32.gmra.mxu0 %v1732_v11 }
 0x153   : > { %2206 = vst [vmem:[%s3755_s25 + $0xd8] sm:$0xff] %v1734_v41  ;;  %v1733_v35 = vmax.f32 %v1669_v62, 0.0  ;;  %v1672_v16 = vadd.f32 %v3745_v6, %v1463_v13  ;;  %v1458_v29 = vadd.f32 %v1457_v12, %v879_v50 }
 0x154   : > { %v2943_v18 = vpop.f32.mrf.mxu1 }
 0x155   : > { %2205 = vst [vmem:[%s3755_s25 + $0xd0] sm:$0xff] %v1733_v35  ;;  %v1736_v1 = vmax.f32 %v1672_v16, 0.0  ;;  %v1671_v19 = vadd.f32 %v3745_v6, %v1458_v29  ;;  %v1473_v38 = vadd.f32 %v2943_v18, %v2839_v15  ;;  %3063 = vmatprep.mubr.f32.mxu0 %v1733_v35 }
 0x156   : > { %v1467_v14 = vpop.f32.mrf.mxu1  ;;  %3064 = vmatmul.mubr.f32.gmra.mxu0 %v1734_v41 }
 0x157   : > { %2208 = vst [vmem:[%s3755_s25 + $0xe8] sm:$0xff] %v1736_v1  ;;  %v1735_v53 = vmax.f32 %v1671_v19, 0.0  ;;  %v1674_v20 = vadd.f32 %v3745_v6, %v1473_v38  ;;  %v1468_v5 = vadd.f32 %v1467_v14, %v889_v4 }
 0x158   : > { %v2946_v27 = vpop.f32.mrf.mxu1 }
 0x159   : > { %2207 = vst [vmem:[%s3755_s25 + $0xe0] sm:$0xff] %v1735_v53  ;;  %v1738_v9 = vmax.f32 %v1674_v20, 0.0  ;;  %v1673_v31 = vadd.f32 %v3745_v6, %v1468_v5  ;;  %v1483_v56 = vadd.f32 %v2946_v27, %v3655_v21  ;;  %3066 = vmatprep.mubr.f32.mxu0 %v1735_v53 }
 0x15a   : > { %v1477_v7 = vpop.f32.mrf.mxu1  ;;  %3067 = vmatmul.mubr.f32.gmra.mxu0 %v1736_v1 }
 0x15b   : > { %2210 = vst [vmem:[%s3755_s25 + $0xf8] sm:$0xff] %v1738_v9  ;;  %v1737_v11 = vmax.f32 %v1673_v31, 0.0  ;;  %v1676_v17 = vadd.f32 %v3745_v6, %v1483_v56  ;;  %v1478_v10 = vadd.f32 %v1477_v7, %v3657_v22 }
 0x15c   : > { %v2949_v44 = vpop.f32.mrf.mxu1 }
 0x15d   : > { %2209 = vst [vmem:[%s3755_s25 + $0xf0] sm:$0xff] %v1737_v11  ;;  %v1740_v50 = vmax.f32 %v1676_v17, 0.0  ;;  %v1675_v59 = vadd.f32 %v3745_v6, %v1478_v10  ;;  %v1493_v8 = vadd.f32 %v2949_v44, %v3659_v23  ;;  %3069 = vmatprep.mubr.f32.mxu0 %v1737_v11 }
 0x15e   : > { %v1487_v21 = vpop.f32.mrf.mxu1  ;;  %3070 = vmatmul.mubr.f32.gmra.mxu0 %v1738_v9 }
 0x15f   : > { %2212 = vst [vmem:[%s3755_s25 + $0x108] sm:$0xff] %v1740_v50  ;;  %v1739_v33 = vmax.f32 %v1675_v59, 0.0  ;;  %v1678_v47 = vadd.f32 %v3745_v6, %v1493_v8  ;;  %v1488_v41 = vadd.f32 %v1487_v21, %v3661_v24 }
 0x160   : > { %v2952_v62 = vpop.f32.mrf.mxu1 }
 0x161   : > { %2211 = vst [vmem:[%s3755_s25 + $0x100] sm:$0xff] %v1739_v33  ;;  %v1742_v22 = vmax.f32 %v1678_v47, 0.0  ;;  %v1677_v13 = vadd.f32 %v3745_v6, %v1488_v41  ;;  %v1503_v15 = vadd.f32 %v2952_v62, %v3663_v25  ;;  %3072 = vmatprep.mubr.f32.mxu0 %v1739_v33 }
 0x162   : > { %v1497_v23 = vpop.f32.mrf.mxu1  ;;  %3073 = vmatmul.mubr.f32.gmra.mxu0 %v1740_v50 }
 0x163   : > { %2214 = vst [vmem:[%s3755_s25 + $0x118] sm:$0xff] %v1742_v22  ;;  %v1741_v12 = vmax.f32 %v1677_v13, 0.0  ;;  %v1680_v35 = vadd.f32 %v3745_v6, %v1503_v15  ;;  %v1498_v16 = vadd.f32 %v1497_v23, %v3665_v26 }
 0x164   : > { %v2955_v29 = vpop.f32.mrf.mxu1 }
 0x165   : > { %2213 = vst [vmem:[%s3755_s25 + $0x110] sm:$0xff] %v1741_v12  ;;  %v1744_v24 = vmax.f32 %v1680_v35, 0.0  ;;  %v1679_v18 = vadd.f32 %v3745_v6, %v1498_v16  ;;  %v1513_v1 = vadd.f32 %v2955_v29, %v3667_v28  ;;  %3075 = vmatprep.mubr.f32.mxu0 %v1741_v12 }
 0x166   : > { %v1507_v25 = vpop.f32.mrf.mxu1  ;;  %3076 = vmatmul.mubr.f32.gmra.mxu0 %v1742_v22 }
 0x167   : > { %2216 = vst [vmem:[%s3755_s25 + $0x128] sm:$0xff] %v1744_v24  ;;  %v1743_v19 = vmax.f32 %v1679_v18, 0.0  ;;  %v1682_v38 = vadd.f32 %v3745_v6, %v1513_v1  ;;  %v1508_v4 = vadd.f32 %v1507_v25, %v3669_v30 }
 0x168   : > { %v2958_v14 = vpop.f32.mrf.mxu1 }
 0x169   : > { %2215 = vst [vmem:[%s3755_s25 + $0x120] sm:$0xff] %v1743_v19  ;;  %v1746_v26 = vmax.f32 %v1682_v38, 0.0  ;;  %v1681_v53 = vadd.f32 %v3745_v6, %v1508_v4  ;;  %v1523_v20 = vadd.f32 %v2958_v14, %v3671_v32  ;;  %3078 = vmatprep.mubr.f32.mxu0 %v1743_v19 }
 0x16a   : > { %v1517_v28 = vpop.f32.mrf.mxu1  ;;  %3079 = vmatmul.mubr.f32.gmra.mxu0 %v1744_v24 }
 0x16b   : > { %2218 = vst [vmem:[%s3755_s25 + $0x138] sm:$0xff] %v1746_v26  ;;  %v1745_v5 = vmax.f32 %v1681_v53, 0.0  ;;  %v1684_v27 = vadd.f32 %v3745_v6, %v1523_v20  ;;  %v1518_v9 = vadd.f32 %v1517_v28, %v3673_v34 }
 0x16c   : > { %v2961_v31 = vpop.f32.mrf.mxu1 }
 0x16d   : > { %2217 = vst [vmem:[%s3755_s25 + $0x130] sm:$0xff] %v1745_v5  ;;  %v1748_v30 = vmax.f32 %v1684_v27, 0.0  ;;  %v1683_v56 = vadd.f32 %v3745_v6, %v1518_v9  ;;  %v1533_v7 = vadd.f32 %v2961_v31, %v3675_v36  ;;  %3081 = vmatprep.mubr.f32.mxu0 %v1745_v5 }
 0x16e   : > { %v1527_v32 = vpop.f32.mrf.mxu1  ;;  %3082 = vmatmul.mubr.f32.gmra.mxu0 %v1746_v26 }
 0x16f   : > { %2220 = vst [vmem:[%s3755_s25 + $0x148] sm:$0xff] %v1748_v30  ;;  %v1747_v11 = vmax.f32 %v1683_v56, 0.0  ;;  %v1686_v17 = vadd.f32 %v3745_v6, %v1533_v7  ;;  %v1528_v10 = vadd.f32 %v1527_v32, %v3677_v37 }
 0x170   : > { %v2964_v44 = vpop.f32.mrf.mxu1 }
 0x171   : > { %2219 = vst [vmem:[%s3755_s25 + $0x140] sm:$0xff] %v1747_v11  ;;  %v1750_v34 = vmax.f32 %v1686_v17, 0.0  ;;  %v1685_v50 = vadd.f32 %v3745_v6, %v1528_v10  ;;  %v1543_v59 = vadd.f32 %v2964_v44, %v3681_v39  ;;  %3084 = vmatprep.mubr.f32.mxu0 %v1747_v11 }
 0x172   : > { %v1537_v36 = vpop.f32.mrf.mxu1  ;;  %3085 = vmatmul.mubr.f32.gmra.mxu0 %v1748_v30 }
 0x173   : > { %2222 = vst [vmem:[%s3755_s25 + $0x158] sm:$0xff] %v1750_v34  ;;  %v1749_v8 = vmax.f32 %v1685_v50, 0.0  ;;  %v1688_v21 = vadd.f32 %v3745_v6, %v1543_v59  ;;  %v1538_v33 = vadd.f32 %v1537_v36, %v3683_v40 }
 0x174   : > { %v2967_v47 = vpop.f32.mrf.mxu1 }
 0x175   : > { %2221 = vst [vmem:[%s3755_s25 + $0x150] sm:$0xff] %v1749_v8  ;;  %v1752_v37 = vmax.f32 %v1688_v21, 0.0  ;;  %v1687_v41 = vadd.f32 %v3745_v6, %v1538_v33  ;;  %v1553_v62 = vadd.f32 %v2967_v47, %v3687_v42  ;;  %3087 = vmatprep.mubr.f32.mxu0 %v1749_v8 }
 0x176   : > { %v1547_v39 = vpop.f32.mrf.mxu1  ;;  %3088 = vmatmul.mubr.f32.gmra.mxu0 %v1750_v34 }
 0x177   : > { %2224 = vst [vmem:[%s3755_s25 + $0x168] sm:$0xff] %v1752_v37  ;;  %v1751_v22 = vmax.f32 %v1687_v41, 0.0  ;;  %v1690_v13 = vadd.f32 %v3745_v6, %v1553_v62  ;;  %v1548_v15 = vadd.f32 %v1547_v39, %v3689_v43 }
 0x178   : > { %v2970_v23 = vpop.f32.mrf.mxu1 }
 0x179   : > { %2223 = vst [vmem:[%s3755_s25 + $0x160] sm:$0xff] %v1751_v22  ;;  %v1754_v40 = vmax.f32 %v1690_v13, 0.0  ;;  %v1689_v12 = vadd.f32 %v3745_v6, %v1548_v15  ;;  %v1563_v35 = vadd.f32 %v2970_v23, %v3693_v45  ;;  %3090 = vmatprep.mubr.f32.mxu0 %v1751_v22 }
 0x17a   : > { %v1557_v42 = vpop.f32.mrf.mxu1  ;;  %3091 = vmatmul.mubr.f32.gmra.mxu0 %v1752_v37 }
 0x17b   : > { %2226 = vst [vmem:[%s3755_s25 + $0x178] sm:$0xff] %v1754_v40  ;;  %v1753_v16 = vmax.f32 %v1689_v12, 0.0  ;;  %v1692_v29 = vadd.f32 %v3745_v6, %v1563_v35  ;;  %v1558_v24 = vadd.f32 %v1557_v42, %v3695_v46 }
 0x17c   : > { %v2973_v18 = vpop.f32.mrf.mxu1 }
 0x17d   : > { %2225 = vst [vmem:[%s3755_s25 + $0x170] sm:$0xff] %v1753_v16  ;;  %v1756_v43 = vmax.f32 %v1692_v29, 0.0  ;;  %v1691_v1 = vadd.f32 %v3745_v6, %v1558_v24  ;;  %v1573_v25 = vadd.f32 %v2973_v18, %v3699_v48  ;;  %3093 = vmatprep.mubr.f32.mxu0 %v1753_v16 }
 0x17e   : > { %v1567_v45 = vpop.f32.mrf.mxu1  ;;  %3094 = vmatmul.mubr.f32.gmra.mxu0 %v1754_v40 }
 0x17f   : > { %2228 = vst [vmem:[%s3755_s25 + $0x188] sm:$0xff] %v1756_v43  ;;  %v1755_v19 = vmax.f32 %v1691_v1, 0.0  ;;  %v1694_v38 = vadd.f32 %v3745_v6, %v1573_v25  ;;  %v1568_v4 = vadd.f32 %v1567_v45, %v3701_v49 }
 0x180   : > { %v2976_v14 = vpop.f32.mrf.mxu1 }
 0x181   : > { %2227 = vst [vmem:[%s3755_s25 + $0x180] sm:$0xff] %v1755_v19  ;;  %v1758_v46 = vmax.f32 %v1694_v38, 0.0  ;;  %v1693_v26 = vadd.f32 %v3745_v6, %v1568_v4  ;;  %v1583_v53 = vadd.f32 %v2976_v14, %v3705_v51  ;;  %3096 = vmatprep.mubr.f32.mxu0 %v1755_v19 }
 0x182   : > { %v1577_v48 = vpop.f32.mrf.mxu1  ;;  %3097 = vmatmul.mubr.f32.gmra.mxu0 %v1756_v43 }
 0x183   : > { %2230 = vst [vmem:[%s3755_s25 + $0x198] sm:$0xff] %v1758_v46  ;;  %v1757_v20 = vmax.f32 %v1693_v26, 0.0  ;;  %v1696_v28 = vadd.f32 %v3745_v6, %v1583_v53  ;;  %v1578_v5 = vadd.f32 %v1577_v48, %v3707_v52 }
 0x184   : > { %v2979_v27 = vpop.f32.mrf.mxu1 }
 0x185   : > { %2229 = vst [vmem:[%s3755_s25 + $0x190] sm:$0xff] %v1757_v20  ;;  %v1760_v49 = vmax.f32 %v1696_v28, 0.0  ;;  %v1695_v9 = vadd.f32 %v3745_v6, %v1578_v5  ;;  %v1593_v31 = vadd.f32 %v2979_v27, %v3711_v54  ;;  %3099 = vmatprep.mubr.f32.mxu0 %v1757_v20 }
 0x186   : > { %v1587_v51 = vpop.f32.mrf.mxu1  ;;  %3100 = vmatmul.mubr.f32.gmra.mxu0 %v1758_v46 }
 0x187   : > { %2232 = vst [vmem:[%s3755_s25 + $0x1a8] sm:$0xff] %v1760_v49  ;;  %v1759_v30 = vmax.f32 %v1695_v9, 0.0  ;;  %v1698_v56 = vadd.f32 %v3745_v6, %v1593_v31  ;;  %v1588_v7 = vadd.f32 %v1587_v51, %v3713_v55 }
 0x188   : > { %v2982_v32 = vpop.f32.mrf.mxu1 }
 0x189   : > { %2231 = vst [vmem:[%s3755_s25 + $0x1a0] sm:$0xff] %v1759_v30  ;;  %v1762_v52 = vmax.f32 %v1698_v56, 0.0  ;;  %v1697_v11 = vadd.f32 %v3745_v6, %v1588_v7  ;;  %v1603_v17 = vadd.f32 %v2982_v32, %v3717_v57  ;;  %3102 = vmatprep.mubr.f32.mxu0 %v1759_v30 }
 0x18a   : > { %v1597_v54 = vpop.f32.mrf.mxu1  ;;  %3103 = vmatmul.mubr.f32.gmra.mxu0 %v1760_v49 }
 0x18b   : > { %2234 = vst [vmem:[%s3755_s25 + $0x1b8] sm:$0xff] %v1762_v52  ;;  %v1761_v10 = vmax.f32 %v1697_v11, 0.0  ;;  %v1700_v44 = vadd.f32 %v3745_v6, %v1603_v17  ;;  %v1598_v34 = vadd.f32 %v1597_v54, %v3719_v58 }
 0x18c   : > { %v2985_v50 = vpop.f32.mrf.mxu1 }
 0x18d   : > { %2233 = vst [vmem:[%s3755_s25 + $0x1b0] sm:$0xff] %v1761_v10  ;;  %v1764_v55 = vmax.f32 %v1700_v44, 0.0  ;;  %v1699_v59 = vadd.f32 %v3745_v6, %v1598_v34  ;;  %v1613_v36 = vadd.f32 %v2985_v50, %v3723_v60  ;;  %3105 = vmatprep.mubr.f32.mxu0 %v1761_v10 }
 0x18e   : > { %v1607_v57 = vpop.f32.mrf.mxu1  ;;  %3106 = vmatmul.mubr.f32.gmra.mxu0 %v1762_v52 }
 0x18f   : > { %2236 = vst [vmem:[%s3755_s25 + $0x1c8] sm:$0xff] %v1764_v55  ;;  %v1763_v8 = vmax.f32 %v1699_v59, 0.0  ;;  %v1702_v21 = vadd.f32 %v3745_v6, %v1613_v36  ;;  %v1608_v33 = vadd.f32 %v1607_v57, %v3725_v61 }
 0x190   : > { %v2988_v47 = vpop.f32.mrf.mxu1 }
 0x191   : > { %2235 = vst [vmem:[%s3755_s25 + $0x1c0] sm:$0xff] %v1763_v8  ;;  %v1766_v58 = vmax.f32 %v1702_v21, 0.0  ;;  %v1701_v37 = vadd.f32 %v3745_v6, %v1608_v33  ;;  %v1623_v41 = vadd.f32 %v2988_v47, %v3729_v63  ;;  %3108 = vmatprep.mubr.f32.mxu0 %v1763_v8 }
 0x192   : > { %v1617_v60 = vpop.f32.mrf.mxu1  ;;  %3109 = vmatmul.mubr.f32.gmra.mxu0 %v1764_v55 }
 0x193   : > { %2238 = vst [vmem:[%s3755_s25 + $0x1d8] sm:$0xff] %v1766_v58  ;;  %v1765_v62 = vmax.f32 %v1701_v37, 0.0  ;;  %v1704_v39 = vadd.f32 %v3745_v6, %v1623_v41  ;;  %v1618_v22 = vadd.f32 %v1617_v60, %v3731_v0 }
 0x194   : > { %v2991_v13 = vpop.f32.mrf.mxu1 }
 0x195   : > { %2237 = vst [vmem:[%s3755_s25 + $0x1d0] sm:$0xff] %v1765_v62  ;;  %v1768_v61 = vmax.f32 %v1704_v39, 0.0  ;;  %v1703_v15 = vadd.f32 %v3745_v6, %v1618_v22  ;;  %v1633_v63 = vadd.f32 %v2991_v13, %v3735_v2  ;;  %3111 = vmatprep.mubr.f32.mxu0 %v1765_v62 }
 0x196   : > { %v1627_v23 = vpop.f32.mrf.mxu1  ;;  %3112 = vmatmul.mubr.f32.gmra.mxu0 %v1766_v58 }
 0x197   : > { %2240 = vst [vmem:[%s3755_s25 + $0x1e8] sm:$0xff] %v1768_v61  ;;  %v1767_v40 = vmax.f32 %v1703_v15, 0.0  ;;  %v1706_v12 = vadd.f32 %v3745_v6, %v1633_v63  ;;  %v1628_v0 = vadd.f32 %v1627_v23, %v3737_v3  ;;  %v3949_v3 = vld [vmem:[%s4200_s6] ss:$0 sm:$0xff] }
 0x199   : > { %2239 = vst [vmem:[%s3755_s25 + $0x1e0] sm:$0xff] %v1767_v40  ;;  %v1770_v35 = vmax.f32 %v1706_v12, 0.0  ;;  %v1705_v42 = vadd.f32 %v3745_v6, %v1628_v0  ;;  %3114 = vmatprep.mubr.f32.mxu0 %v1767_v40 }
 0x19a   : > { %3115 = vmatmul.mubr.f32.gmra.mxu0 %v1768_v61 }
 0x19b   : > { %2242 = vst [vmem:[%s3755_s25 + $0x1f8] sm:$0xff] %v1770_v35  ;;  %v1769_v2 = vmax.f32 %v1705_v42, 0.0 }
 0x19d   : > { %2241 = vst [vmem:[%s3755_s25 + $0x1f0] sm:$0xff] %v1769_v2  ;;  %3117 = vmatprep.mubr.f32.mxu0 %v1769_v2  ;;  %s3225_s25 = smov [#allocation2]  }
 0x19e   : > { %3118 = vmatmul.mubr.f32.gmra.mxu0 %v1770_v35  ;;  %s3167_s26 = sshll.u32 %s3225_s25, 4  ;;  %s3168_s26 = int_to_ptr.vmem [resolvable:$false] %s3167_s26 }
 0x19f   : > { %s3169_s10 = scalar_lea.vmem %s3168_s26, 16384  ;;  %p3170_p0 = scmp.lt.s32.totalorder %s3959_s19, %s3168_s26 }
 0x1a0   : > { %p3171_p1 = scmp.lt.s32.totalorder %s3169_s10, %s3163_s22 }
 0x1a2   : > { %p3172_p2 = por %p3171_p1, %p3170_p0 }
 0x1a4   : > { %p3173_p3 = pnand %p3172_p2, %p3166_p13 }
 0x1e2   : > { %v3026_v6 = vpop.f32.mrf.mxu0 }
 0x1e3   : > { %v1866_v16 = vadd.f32 %v3026_v6, %v3949_v3 }
 0x1e4   : > { %v1860_v29 = vpop.f32.mrf.mxu0 }
 0x1e5   : > { %2244 = vst.msk [vmem:[%s3944_s12 + $0x8] sm:$0xff] %vm476_vm1, %v1866_v16  ;;  %v1861_v24 = vadd.f32 %v3949_v3, %v1860_v29 }
 0x1e6   : > { %3176 = shalt.err (!%p3173_p3)
}
 0x1e7   : > { %s3177_s21 = scalar_lea.hbm %s3956_s24, 8192  ;;  %s3181_s18 = scalar_lea.hbm %s4202_s8, 16384 }
 0x1e8   : > { %p3178_p4 = scmp.ne.s32.totalorder %s3956_s24, %s3177_s21  ;;  %p3182_p9 = scmp.lt.s32.totalorder %s3956_s24, %s4202_s8 }
 0x1e9   : > { %p3183_p10 = scmp.lt.s32.totalorder %s3181_s18, %s3177_s21 }
 0x1ea   : > { %p3179_p7 = pnand %p3178_p4, %p3311_p5 }
 0x1eb   : > { %p3184_p11 = por %p3183_p10, %p3182_p9 }
 0x1ec   : > { %p3180_p8 = pneg %p3179_p7 }
 0x1ee   : > { %p3185_p12 = pnand %p3184_p11, %p3180_p8 }
 0x1f0   : > { %3188 = shalt.err (!%p3185_p12)
}
 0x1f1   : > { %s3226_s22 = smov 128   ;;  %s3227_s25 = smov 8   ;;  %v3029_v18 = vpop.f32.mrf.mxu0  ;;  %2243 = vst.msk [vmem:[%s3944_s12] sm:$0xff] %vm476_vm1, %v1861_v24 }
 0x1f2   : > { %3122 = dma.vmem_to_hbm [thread:$0]  (%p3311_p5), %s3959_s19, 8192, %s3956_s24, %s3966_s9, %s3226_s22, %s3226_s22, %s3227_s25   ;;  %v1876_v43 = vadd.f32 %v3029_v18, %v3949_v3 }
 0x1f3   : > { %v1870_v1 = vpop.f32.mrf.mxu0 }
 0x1f4   : > { %2246 = vst.msk [vmem:[%s3944_s12 + $0x18] sm:$0xff] %vm476_vm1, %v1876_v43  ;;  %v1871_v25 = vadd.f32 %v3949_v3, %v1870_v1 }
 0x1f5   : > { %v3032_v45 = vpop.f32.mrf.mxu0 }
 0x1f6   : > { %2245 = vst.msk [vmem:[%s3944_s12 + $0x10] sm:$0xff] %vm476_vm1, %v1871_v25  ;;  %v1886_v19 = vadd.f32 %v3032_v45, %v3949_v3 }
 0x1f7   : > { %v1880_v38 = vpop.f32.mrf.mxu0 }
 0x1f8   : > { %2248 = vst.msk [vmem:[%s3944_s12 + $0x28] sm:$0xff] %vm476_vm1, %v1886_v19  ;;  %v1881_v4 = vadd.f32 %v3949_v3, %v1880_v38 }
 0x1f9   : > { %v3035_v14 = vpop.f32.mrf.mxu0 }
 0x1fa   : > { %2247 = vst.msk [vmem:[%s3944_s12 + $0x20] sm:$0xff] %vm476_vm1, %v1881_v4  ;;  %v1896_v46 = vadd.f32 %v3035_v14, %v3949_v3 }
 0x1fb   : > { %v1890_v26 = vpop.f32.mrf.mxu0 }
 0x1fc   : > { %2250 = vst.msk [vmem:[%s3944_s12 + $0x38] sm:$0xff] %vm476_vm1, %v1896_v46  ;;  %v1891_v53 = vadd.f32 %v3949_v3, %v1890_v26 }
 0x1fd   : > { %v3038_v48 = vpop.f32.mrf.mxu0 }
 0x1fe   : > { %2249 = vst.msk [vmem:[%s3944_s12 + $0x30] sm:$0xff] %vm476_vm1, %v1891_v53  ;;  %v1906_v20 = vadd.f32 %v3038_v48, %v3949_v3 }
 0x1ff   : > { %v1900_v28 = vpop.f32.mrf.mxu0 }
 0x200   : > { %2252 = vst.msk [vmem:[%s3944_s12 + $0x48] sm:$0xff] %vm476_vm1, %v1906_v20  ;;  %v1901_v5 = vadd.f32 %v3949_v3, %v1900_v28 }
 0x201   : > { %v3041_v27 = vpop.f32.mrf.mxu0 }
 0x202   : > { %2251 = vst.msk [vmem:[%s3944_s12 + $0x40] sm:$0xff] %vm476_vm1, %v1901_v5  ;;  %v1916_v49 = vadd.f32 %v3041_v27, %v3949_v3 }
 0x203   : > { %v1910_v9 = vpop.f32.mrf.mxu0 }
 0x204   : > { %2254 = vst.msk [vmem:[%s3944_s12 + $0x58] sm:$0xff] %vm476_vm1, %v1916_v49  ;;  %v1911_v31 = vadd.f32 %v3949_v3, %v1910_v9 }
 0x205   : > { %v3044_v51 = vpop.f32.mrf.mxu0 }
 0x206   : > { %2253 = vst.msk [vmem:[%s3944_s12 + $0x50] sm:$0xff] %vm476_vm1, %v1911_v31  ;;  %v1926_v30 = vadd.f32 %v3044_v51, %v3949_v3 }
 0x207   : > { %v1920_v56 = vpop.f32.mrf.mxu0 }
 0x208   : > { %2256 = vst.msk [vmem:[%s3944_s12 + $0x68] sm:$0xff] %vm476_vm1, %v1926_v30  ;;  %v1921_v7 = vadd.f32 %v3949_v3, %v1920_v56 }
 0x209   : > { %v3047_v32 = vpop.f32.mrf.mxu0 }
 0x20a   : > { %2255 = vst.msk [vmem:[%s3944_s12 + $0x60] sm:$0xff] %vm476_vm1, %v1921_v7  ;;  %v1936_v52 = vadd.f32 %v3047_v32, %v3949_v3 }
 0x20b   : > { %v1930_v11 = vpop.f32.mrf.mxu0 }
 0x20c   : > { %2258 = vst.msk [vmem:[%s3944_s12 + $0x78] sm:$0xff] %vm476_vm1, %v1936_v52  ;;  %v1931_v17 = vadd.f32 %v3949_v3, %v1930_v11 }
 0x20d   : > { %v3050_v54 = vpop.f32.mrf.mxu0 }
 0x20e   : > { %2257 = vst.msk [vmem:[%s3944_s12 + $0x70] sm:$0xff] %vm476_vm1, %v1931_v17  ;;  %v1946_v10 = vadd.f32 %v3050_v54, %v3949_v3 }
 0x20f   : > { %v1940_v44 = vpop.f32.mrf.mxu0 }
 0x210   : > { %2260 = vst.msk [vmem:[%s3944_s12 + $0x88] sm:$0xff] %vm476_vm1, %v1946_v10  ;;  %v1941_v34 = vadd.f32 %v3949_v3, %v1940_v44 }
 0x211   : > { %v3053_v50 = vpop.f32.mrf.mxu0 }
 0x212   : > { %2259 = vst.msk [vmem:[%s3944_s12 + $0x80] sm:$0xff] %vm476_vm1, %v1941_v34  ;;  %v1956_v55 = vadd.f32 %v3053_v50, %v3949_v3 }
 0x213   : > { %v1950_v59 = vpop.f32.mrf.mxu0 }
 0x214   : > { %2262 = vst.msk [vmem:[%s3944_s12 + $0x98] sm:$0xff] %vm476_vm1, %v1956_v55  ;;  %v1951_v36 = vadd.f32 %v3949_v3, %v1950_v59 }
 0x215   : > { %v3056_v57 = vpop.f32.mrf.mxu0 }
 0x216   : > { %2261 = vst.msk [vmem:[%s3944_s12 + $0x90] sm:$0xff] %vm476_vm1, %v1951_v36  ;;  %v1966_v8 = vadd.f32 %v3056_v57, %v3949_v3 }
 0x217   : > { %v1960_v21 = vpop.f32.mrf.mxu0 }
 0x218   : > { %2264 = vst.msk [vmem:[%s3944_s12 + $0xa8] sm:$0xff] %vm476_vm1, %v1966_v8  ;;  %v1961_v33 = vadd.f32 %v3949_v3, %v1960_v21 }
 0x219   : > { %v3059_v47 = vpop.f32.mrf.mxu0 }
 0x21a   : > { %2263 = vst.msk [vmem:[%s3944_s12 + $0xa0] sm:$0xff] %vm476_vm1, %v1961_v33  ;;  %v1976_v58 = vadd.f32 %v3059_v47, %v3949_v3 }
 0x21b   : > { %v1970_v37 = vpop.f32.mrf.mxu0 }
 0x21c   : > { %2266 = vst.msk [vmem:[%s3944_s12 + $0xb8] sm:$0xff] %vm476_vm1, %v1976_v58  ;;  %v1971_v41 = vadd.f32 %v3949_v3, %v1970_v37 }
 0x21d   : > { %v3062_v60 = vpop.f32.mrf.mxu0 }
 0x21e   : > { %2265 = vst.msk [vmem:[%s3944_s12 + $0xb0] sm:$0xff] %vm476_vm1, %v1971_v41  ;;  %v1986_v62 = vadd.f32 %v3062_v60, %v3949_v3 }
 0x21f   : > { %v1980_v39 = vpop.f32.mrf.mxu0 }
 0x220   : > { %2268 = vst.msk [vmem:[%s3944_s12 + $0xc8] sm:$0xff] %vm476_vm1, %v1986_v62  ;;  %v1981_v22 = vadd.f32 %v3949_v3, %v1980_v39 }
 0x221   : > { %v3065_v13 = vpop.f32.mrf.mxu0 }
 0x222   : > { %2267 = vst.msk [vmem:[%s3944_s12 + $0xc0] sm:$0xff] %vm476_vm1, %v1981_v22  ;;  %v1996_v61 = vadd.f32 %v3065_v13, %v3949_v3 }
 0x223   : > { %v1990_v15 = vpop.f32.mrf.mxu0 }
 0x224   : > { %2270 = vst.msk [vmem:[%s3944_s12 + $0xd8] sm:$0xff] %vm476_vm1, %v1996_v61  ;;  %v1991_v63 = vadd.f32 %v3949_v3, %v1990_v15 }
 0x225   : > { %v3068_v23 = vpop.f32.mrf.mxu0 }
 0x226   : > { %2269 = vst.msk [vmem:[%s3944_s12 + $0xd0] sm:$0xff] %vm476_vm1, %v1991_v63  ;;  %v2006_v40 = vadd.f32 %v3068_v23, %v3949_v3 }
 0x227   : > { %v2000_v12 = vpop.f32.mrf.mxu0 }
 0x228   : > { %2272 = vst.msk [vmem:[%s3944_s12 + $0xe8] sm:$0xff] %vm476_vm1, %v2006_v40  ;;  %v2001_v0 = vadd.f32 %v3949_v3, %v2000_v12 }
 0x229   : > { %v3071_v35 = vpop.f32.mrf.mxu0 }
 0x22a   : > { %2271 = vst.msk [vmem:[%s3944_s12 + $0xe0] sm:$0xff] %vm476_vm1, %v2001_v0  ;;  %v2016_v42 = vadd.f32 %v3071_v35, %v3949_v3 }
 0x22b   : > { %v2010_v2 = vpop.f32.mrf.mxu0 }
 0x22c   : > { %2274 = vst.msk [vmem:[%s3944_s12 + $0xf8] sm:$0xff] %vm476_vm1, %v2016_v42  ;;  %v2011_v6 = vadd.f32 %v3949_v3, %v2010_v2 }
 0x22d   : > { %v3074_v16 = vpop.f32.mrf.mxu0 }
 0x22e   : > { %2273 = vst.msk [vmem:[%s3944_s12 + $0xf0] sm:$0xff] %vm476_vm1, %v2011_v6  ;;  %v2026_v29 = vadd.f32 %v3074_v16, %v3949_v3 }
 0x22f   : > { %v2020_v24 = vpop.f32.mrf.mxu0 }
 0x230   : > { %2276 = vst.msk [vmem:[%s3944_s12 + $0x108] sm:$0xff] %vm476_vm1, %v2026_v29  ;;  %v2021_v18 = vadd.f32 %v3949_v3, %v2020_v24 }
 0x231   : > { %v3077_v43 = vpop.f32.mrf.mxu0 }
 0x232   : > { %2275 = vst.msk [vmem:[%s3944_s12 + $0x100] sm:$0xff] %vm476_vm1, %v2021_v18  ;;  %v2036_v1 = vadd.f32 %v3077_v43, %v3949_v3 }
 0x233   : > { %v2030_v25 = vpop.f32.mrf.mxu0 }
 0x234   : > { %2278 = vst.msk [vmem:[%s3944_s12 + $0x118] sm:$0xff] %vm476_vm1, %v2036_v1  ;;  %v2031_v45 = vadd.f32 %v3949_v3, %v2030_v25 }
 0x235   : > { %v3080_v19 = vpop.f32.mrf.mxu0 }
 0x236   : > { %2277 = vst.msk [vmem:[%s3944_s12 + $0x110] sm:$0xff] %vm476_vm1, %v2031_v45  ;;  %v2046_v38 = vadd.f32 %v3080_v19, %v3949_v3 }
 0x237   : > { %v2040_v4 = vpop.f32.mrf.mxu0 }
 0x238   : > { %2280 = vst.msk [vmem:[%s3944_s12 + $0x128] sm:$0xff] %vm476_vm1, %v2046_v38  ;;  %v2041_v14 = vadd.f32 %v3949_v3, %v2040_v4 }
 0x239   : > { %v3083_v46 = vpop.f32.mrf.mxu0 }
 0x23a   : > { %2279 = vst.msk [vmem:[%s3944_s12 + $0x120] sm:$0xff] %vm476_vm1, %v2041_v14  ;;  %v2056_v26 = vadd.f32 %v3083_v46, %v3949_v3 }
 0x23b   : > { %v2050_v53 = vpop.f32.mrf.mxu0 }
 0x23c   : > { %2282 = vst.msk [vmem:[%s3944_s12 + $0x138] sm:$0xff] %vm476_vm1, %v2056_v26  ;;  %v2051_v48 = vadd.f32 %v3949_v3, %v2050_v53 }
 0x23d   : > { %v3086_v20 = vpop.f32.mrf.mxu0 }
 0x23e   : > { %2281 = vst.msk [vmem:[%s3944_s12 + $0x130] sm:$0xff] %vm476_vm1, %v2051_v48  ;;  %v2066_v28 = vadd.f32 %v3086_v20, %v3949_v3 }
 0x23f   : > { %v2060_v5 = vpop.f32.mrf.mxu0 }
 0x240   : > { %2284 = vst.msk [vmem:[%s3944_s12 + $0x148] sm:$0xff] %vm476_vm1, %v2066_v28  ;;  %v2061_v27 = vadd.f32 %v3949_v3, %v2060_v5 }
 0x241   : > { %v3089_v49 = vpop.f32.mrf.mxu0 }
 0x242   : > { %2283 = vst.msk [vmem:[%s3944_s12 + $0x140] sm:$0xff] %vm476_vm1, %v2061_v27  ;;  %v2076_v9 = vadd.f32 %v3089_v49, %v3949_v3 }
 0x243   : > { %v2070_v31 = vpop.f32.mrf.mxu0 }
 0x244   : > { %2286 = vst.msk [vmem:[%s3944_s12 + $0x158] sm:$0xff] %vm476_vm1, %v2076_v9  ;;  %v2071_v51 = vadd.f32 %v3949_v3, %v2070_v31 }
 0x245   : > { %v3092_v30 = vpop.f32.mrf.mxu0 }
 0x246   : > { %2285 = vst.msk [vmem:[%s3944_s12 + $0x150] sm:$0xff] %vm476_vm1, %v2071_v51  ;;  %v2086_v56 = vadd.f32 %v3092_v30, %v3949_v3 }
 0x247   : > { %v2080_v7 = vpop.f32.mrf.mxu0 }
 0x248   : > { %2288 = vst.msk [vmem:[%s3944_s12 + $0x168] sm:$0xff] %vm476_vm1, %v2086_v56  ;;  %v2081_v32 = vadd.f32 %v3949_v3, %v2080_v7 }
 0x249   : > { %v3095_v52 = vpop.f32.mrf.mxu0 }
 0x24a   : > { %2287 = vst.msk [vmem:[%s3944_s12 + $0x160] sm:$0xff] %vm476_vm1, %v2081_v32  ;;  %v2096_v11 = vadd.f32 %v3095_v52, %v3949_v3 }
 0x24b   : > { %v2090_v17 = vpop.f32.mrf.mxu0 }
 0x24c   : > { %2290 = vst.msk [vmem:[%s3944_s12 + $0x178] sm:$0xff] %vm476_vm1, %v2096_v11  ;;  %v2091_v54 = vadd.f32 %v3949_v3, %v2090_v17 }
 0x24d   : > { %v3098_v10 = vpop.f32.mrf.mxu0 }
 0x24e   : > { %2289 = vst.msk [vmem:[%s3944_s12 + $0x170] sm:$0xff] %vm476_vm1, %v2091_v54  ;;  %v2106_v44 = vadd.f32 %v3098_v10, %v3949_v3 }
 0x24f   : > { %v2100_v34 = vpop.f32.mrf.mxu0 }
 0x250   : > { %2292 = vst.msk [vmem:[%s3944_s12 + $0x188] sm:$0xff] %vm476_vm1, %v2106_v44  ;;  %v2101_v50 = vadd.f32 %v3949_v3, %v2100_v34 }
 0x251   : > { %v3101_v55 = vpop.f32.mrf.mxu0 }
 0x252   : > { %2291 = vst.msk [vmem:[%s3944_s12 + $0x180] sm:$0xff] %vm476_vm1, %v2101_v50  ;;  %v2116_v59 = vadd.f32 %v3101_v55, %v3949_v3 }
 0x253   : > { %v2110_v36 = vpop.f32.mrf.mxu0 }
 0x254   : > { %2294 = vst.msk [vmem:[%s3944_s12 + $0x198] sm:$0xff] %vm476_vm1, %v2116_v59  ;;  %v2111_v57 = vadd.f32 %v3949_v3, %v2110_v36 }
 0x255   : > { %v3104_v8 = vpop.f32.mrf.mxu0 }
 0x256   : > { %2293 = vst.msk [vmem:[%s3944_s12 + $0x190] sm:$0xff] %vm476_vm1, %v2111_v57  ;;  %v2126_v21 = vadd.f32 %v3104_v8, %v3949_v3 }
 0x257   : > { %v2120_v33 = vpop.f32.mrf.mxu0 }
 0x258   : > { %2296 = vst.msk [vmem:[%s3944_s12 + $0x1a8] sm:$0xff] %vm476_vm1, %v2126_v21  ;;  %v2121_v47 = vadd.f32 %v3949_v3, %v2120_v33 }
 0x259   : > { %v3107_v58 = vpop.f32.mrf.mxu0 }
 0x25a   : > { %2295 = vst.msk [vmem:[%s3944_s12 + $0x1a0] sm:$0xff] %vm476_vm1, %v2121_v47  ;;  %v2136_v37 = vadd.f32 %v3107_v58, %v3949_v3 }
 0x25b   : > { %v2130_v41 = vpop.f32.mrf.mxu0 }
 0x25c   : > { %2298 = vst.msk [vmem:[%s3944_s12 + $0x1b8] sm:$0xff] %vm476_vm1, %v2136_v37  ;;  %v2131_v60 = vadd.f32 %v3949_v3, %v2130_v41 }
 0x25d   : > { %v3110_v62 = vpop.f32.mrf.mxu0 }
 0x25e   : > { %2297 = vst.msk [vmem:[%s3944_s12 + $0x1b0] sm:$0xff] %vm476_vm1, %v2131_v60  ;;  %v2146_v39 = vadd.f32 %v3110_v62, %v3949_v3 }
 0x25f   : > { %v2140_v22 = vpop.f32.mrf.mxu0 }
 0x260   : > { %2300 = vst.msk [vmem:[%s3944_s12 + $0x1c8] sm:$0xff] %vm476_vm1, %v2146_v39  ;;  %v2141_v13 = vadd.f32 %v3949_v3, %v2140_v22 }
 0x261   : > { %v3113_v61 = vpop.f32.mrf.mxu0 }
 0x262   : > { %2299 = vst.msk [vmem:[%s3944_s12 + $0x1c0] sm:$0xff] %vm476_vm1, %v2141_v13  ;;  %v2156_v15 = vadd.f32 %v3113_v61, %v3949_v3 }
 0x263   : > { %v2150_v63 = vpop.f32.mrf.mxu0 }
 0x264   : > { %2302 = vst.msk [vmem:[%s3944_s12 + $0x1d8] sm:$0xff] %vm476_vm1, %v2156_v15  ;;  %v2151_v23 = vadd.f32 %v3949_v3, %v2150_v63 }
 0x265   : > { %v3116_v40 = vpop.f32.mrf.mxu0 }
 0x266   : > { %2301 = vst.msk [vmem:[%s3944_s12 + $0x1d0] sm:$0xff] %vm476_vm1, %v2151_v23  ;;  %v2166_v12 = vadd.f32 %v3116_v40, %v3949_v3 }
 0x267   : > { %v2160_v0 = vpop.f32.mrf.mxu0 }
 0x268   : > { %2304 = vst.msk [vmem:[%s3944_s12 + $0x1e8] sm:$0xff] %vm476_vm1, %v2166_v12  ;;  %v2161_v35 = vadd.f32 %v3949_v3, %v2160_v0 }
 0x269   : > { %v3119_v42 = vpop.f32.mrf.mxu0 }
 0x26a   : > { %2303 = vst.msk [vmem:[%s3944_s12 + $0x1e0] sm:$0xff] %vm476_vm1, %v2161_v35  ;;  %v2176_v2 = vadd.f32 %v3119_v42, %v3949_v3 }
 0x26b   : > { %v2170_v6 = vpop.f32.mrf.mxu0 }
 0x26c   : > { %2306 = vst.msk [vmem:[%s3944_s12 + $0x1f8] sm:$0xff] %vm476_vm1, %v2176_v2  ;;  %v2171_v16 = vadd.f32 %v3949_v3, %v2170_v6 }
 0x26e   : > { %2305 = vst.msk [vmem:[%s3944_s12 + $0x1f0] sm:$0xff] %vm476_vm1, %v2171_v16 }
 0x26f PF: > { %p3128_p5 = scmp.ge.s32.totalorder %s3223_s30, 2  ;;  %s2353_s15 = sand.u32 1, %s3211_s27  }
 0x270   : > { %s2354_s19 = scalar_lea.sflag [#allocation3], %s2353_s15 }
 0x271   : > { %p3125_p13 = pnand %p3128_p5, %p3315_p6 }
 0x273   : > { %p3126_p0 = pneg %p3125_p13 }
 0x275   : > { %3206 = dma.done.wait (%p3126_p0), %s2354_s19, 8192  }
 0x276   : > { %3208 = vsyncadd (%p3126_p0), %s2354_s19, 4294959104  ;;  %p19_p1 = scmp.ge.s32.totalorder %s3298_s11, 4   ;;  %s4205_s27 = smov %s3215_s28 }
 0x277   : > { %s4206_s28 = smov %s3219_s29  ;;  %s4207_s29 = smov %s3309_s14 }
 0x278   : > { %s4208_s30 = smov %s3298_s11  ;;  %21 = sbr.rel (!%p19_p1) target bundleno = 3 (0x3), region = 98 }
 0x27d   :  { %2359 = vsyncpa [#allocation3], 1 }
 0x27e   :  { %2361 = vsyncpa [#allocation3 + $0x1], 1 }

</bundles_post_ra>
